<compile_context>
chip_gen: v6e
topology: v6e:2x2x1
jax: 0.10.0
libtpu: 0.0.40
codegen_flags: <defaults>
</compile_context>

<pallas_src>
import functools

import jax
import jax.numpy as jnp
import numpy as np
from jax.experimental import pallas as pl
from jax.experimental.pallas import tpu as pltpu

KSIZE = 5        # Conv2d kernel_size
POOL = 5         # MaxPool2d kernel_size (stride = kernel_size, padding 0)
C_IN, C_OUT = 3, 10
CH_PAD = 16      # conv out-channels padded to 16 for the packed first Linear
LANE = 128       # lane-dense padding target for every K / N dimension
N_OUT = 4        # final logits width


def _round_up(n, m):
    return (n + m - 1) // m * m


# --------------------------- fused Pallas kernel ----------------------------

def _fused_forward_kernel(patches_ref, wc_ref, bc_ref, w1_ref, b1_ref,
                          wm_ref, bm_ref, out_ref, pooled_ref, *,
                          batch_pad, n_pos, n_mid, offs_per_step):
    """conv(im2col matmul)+ReLU+MaxPool + 7-layer MLP, all resident in VMEM.

    patches_ref : [offs_per_step, n_pos*batch_pad, LANE] bf16, rows (ph,pw,b),
                  features (c,kh,kw) zero-padded to LANE; one grid step owns
                  `offs_per_step` pooling-window offsets.
    wc_ref      : [LANE, LANE] bf16   conv weight as matmul matrix
    bc_ref      : [1, LANE]    f32
    w1_ref      : [n_pos*CH_PAD, LANE] bf16  first Linear, densely packed
    b1_ref      : [1, LANE]    f32
    wm_ref      : [n_mid, LANE, LANE] bf16   remaining Linears
    bm_ref      : [n_mid, 1, LANE]    f32
    out_ref     : [batch_pad, LANE]   f32
    pooled_ref  : VMEM scratch [n_pos*batch_pad, LANE] f32 (running max)
    """
    step = pl.program_id(0)
    wc = wc_ref[...]

    # Conv matmuls for this step's pooling-window offsets.  Bias add and ReLU
    # are hoisted out of the loop (ReLU monotone, constant bias commutes with
    # max), so this is pure MXU push plus a running elementwise max.
    m = jnp.dot(patches_ref[0], wc, preferred_element_type=jnp.float32)
    for j in range(1, offs_per_step):
        y = jnp.dot(patches_ref[j], wc, preferred_element_type=jnp.float32)
        m = jnp.maximum(m, y)

    @pl.when(step == 0)
    def _():
        pooled_ref[...] = m

    @pl.when(step != 0)
    def _():
        pooled_ref[...] = jnp.maximum(pooled_ref[...], m)

    # Final grid step: apply bias + ReLU once, then chain the MLP in VMEM.
    @pl.when(step == pl.num_programs(0) - 1)
    def _():
        pooled = jnp.maximum(pooled_ref[...] + bc_ref[...], 0.0)
        # pooled: [n_pos*batch_pad, LANE]; rows (ph,pw,b), lanes out-channels
        # (lanes >= C_OUT are exact zeros: zero-padded weight/bias, ReLU(0)=0).

        # First Linear as ONE matmul: densely pack (position, channel) into
        # n_pos*CH_PAD lanes so only 256 weight rows are loaded instead of
        # n_pos*128 = 2048, and the weight slab carries no zero padding rows.
        pieces = [pooled[p * batch_pad:(p + 1) * batch_pad, :CH_PAD]
                  for p in range(n_pos)]
        lhs1 = jnp.concatenate(pieces, axis=1).astype(jnp.bfloat16)
        h = jnp.dot(lhs1, w1_ref[...], preferred_element_type=jnp.float32)
        h = jnp.maximum(h + b1_ref[...], 0.0)

        # Remaining Linear layers (ReLU on all but the last).
        for i in range(n_mid):
            h = jnp.dot(h.astype(jnp.bfloat16), wm_ref[i],
                        preferred_element_type=jnp.float32) + bm_ref[i]
            if i < n_mid - 1:
                h = jnp.maximum(h, 0.0)

        out_ref[...] = h.astype(out_ref.dtype)


# ------------------------------- glue (JAX) ---------------------------------

def _build_patches(x, batch_pad):
    """im2col with the pooling-window offset as the leading axis.

    Returns [POOL*POOL, PH*PW*batch_pad, LANE]; rows ordered (ph, pw, b),
    features ordered (c, kh, kw), zero-padded to LANE lanes.
    """
    B, C, H, W = x.shape
    OH, OW = H - KSIZE + 1, W - KSIZE + 1
    PH, PW = OH // POOL, OW // POOL

    dh = jnp.arange(POOL)
    dw = jnp.arange(POOL)
    kh = jnp.arange(KSIZE)
    kw = jnp.arange(KSIZE)
    ph = jnp.arange(PH)
    pw = jnp.arange(PW)
    hh = POOL * ph[None, :, None] + dh[:, None, None] + kh[None, None, :]
    ww = POOL * pw[None, :, None] + dw[:, None, None] + kw[None, None, :]

    xh = x[:, :, hh, :]                     # [B, C, POOL, PH, K, W]
    xw = xh[..., ww]                        # [B, C, POOL, PH, K, POOL, PW, K]
    # axes: (b, c, dh, ph, kh, dw, pw, kw) -> (dh, dw, ph, pw, b, c, kh, kw)
    p8 = jnp.transpose(xw, (2, 5, 3, 6, 0, 1, 4, 7))
    p8 = p8.reshape(POOL * POOL, PH * PW, B, C * KSIZE * KSIZE)
    p8 = jnp.pad(p8, ((0, 0), (0, 0), (0, batch_pad - B),
                      (0, LANE - C * KSIZE * KSIZE)))
    return p8.reshape(POOL * POOL, PH * PW * batch_pad, LANE)


def _pad2(w):
    r, c = w.shape
    return jnp.pad(w, ((0, LANE - r), (0, LANE - c)))


def _pad1(b):
    return jnp.pad(b, (0, LANE - b.shape[0]))


def forward(x, params):
    B, C, H, W = x.shape
    assert C == C_IN
    OH, OW = H - KSIZE + 1, W - KSIZE + 1
    PH, PW = OH // POOL, OW // POOL
    n_pos = PH * PW
    n_off = POOL * POOL
    batch_pad = _round_up(B, 8)
    offs_per_step = 5 if n_off % 5 == 0 else 1
    n_steps = n_off // offs_per_step
    n_rows = n_pos * batch_pad

    conv_w, conv_b = params["conv"]
    mlp = params["mlp"]
    n_mid = len(mlp) - 1

    # Conv weight as an im2col matmul matrix, lane padded, bf16 (MXU native).
    wc = _pad2(conv_w.reshape(C_OUT, C_IN * KSIZE * KSIZE).T).astype(jnp.bfloat16)
    bc = _pad1(conv_b).reshape(1, LANE)                              # f32

    # First Linear (torch Flatten row order (c, ph, pw)) packed densely into a
    # single [n_pos*CH_PAD, LANE] slab with row index p*CH_PAD + c.
    w1, b1 = mlp[0]
    n1 = w1.shape[1]
    w1r = w1.reshape(C_OUT, n_pos, n1).transpose(1, 0, 2)            # [p, c, n]
    w1r = jnp.pad(w1r, ((0, 0), (0, CH_PAD - C_OUT), (0, LANE - n1)))
    w1r = w1r.reshape(n_pos * CH_PAD, LANE).astype(jnp.bfloat16)     # [256,128]
    b1p = _pad1(b1).reshape(1, LANE)                                 # f32

    wm = jnp.stack([_pad2(w) for w, _ in mlp[1:]]).astype(jnp.bfloat16)
    bm = jnp.stack([_pad1(b).reshape(1, LANE) for _, b in mlp[1:]])  # [6,1,128]

    patches = _build_patches(x, batch_pad).astype(jnp.bfloat16)      # [25,128,128]

    flops = (2 * n_off * n_rows * LANE * LANE
             + 2 * batch_pad * n_pos * CH_PAD * LANE
             + n_mid * 2 * batch_pad * LANE * LANE)
    bytes_accessed = sum(int(a.size) * a.dtype.itemsize
                         for a in (patches, wc, bc, w1r, b1p, wm, bm))
    bytes_accessed += batch_pad * LANE * 4   # output

    kernel = functools.partial(_fused_forward_kernel, batch_pad=batch_pad,
                               n_pos=n_pos, n_mid=n_mid,
                               offs_per_step=offs_per_step)
    out = pl.pallas_call(
        kernel,
        out_shape=jax.ShapeDtypeStruct((batch_pad, LANE), jnp.float32),
        grid_spec=pltpu.PrefetchScalarGridSpec(
            num_scalar_prefetch=0,
            grid=(n_steps,),
            in_specs=[
                # Only `patches` advances with the grid -> its HBM->VMEM DMA is
                # pipelined behind the conv matmuls; weights are fetched once.
                pl.BlockSpec((offs_per_step, n_rows, LANE), lambda s: (s, 0, 0)),
                pl.BlockSpec((LANE, LANE), lambda s: (0, 0)),
                pl.BlockSpec((1, LANE), lambda s: (0, 0)),
                pl.BlockSpec((n_pos * CH_PAD, LANE), lambda s: (0, 0)),
                pl.BlockSpec((1, LANE), lambda s: (0, 0)),
                pl.BlockSpec((n_mid, LANE, LANE), lambda s: (0, 0, 0)),
                pl.BlockSpec((n_mid, 1, LANE), lambda s: (0, 0, 0)),
            ],
            out_specs=pl.BlockSpec((batch_pad, LANE), lambda s: (0, 0)),
            scratch_shapes=[pltpu.VMEM((n_rows, LANE), jnp.float32)],
        ),
        compiler_params=pltpu.CompilerParams(
            dimension_semantics=("arbitrary",)),
        cost_estimate=pl.CostEstimate(flops=int(flops), transcendentals=0,
                                      bytes_accessed=int(bytes_accessed)),
    )(patches, wc, bc, w1r, b1p, wm, bm)

    return out[:B, :N_OUT]


# ------------------------------ parameters ----------------------------------

def init_params(key, feat_in):
    keys = jax.random.split(key, 9)
    conv_w = jax.random.normal(keys[0], (C_OUT, C_IN, KSIZE, KSIZE),
                               jnp.float32) / np.sqrt(C_IN * KSIZE * KSIZE)
    conv_b = 0.01 * jax.random.normal(keys[1], (C_OUT,), jnp.float32)
    dims = [feat_in, 100, 100, 100, 100, 100, 10, 4]
    mlp = []
    for i in range(7):
        kw_, kb = jax.random.split(keys[2 + i])
        w = jax.random.normal(kw_, (dims[i], dims[i + 1]),
                              jnp.float32) / np.sqrt(dims[i])
        b = 0.01 * jax.random.normal(kb, (dims[i + 1],), jnp.float32)
        mlp.append((w, b))
    return {"conv": (conv_w, conv_b), "mlp": mlp}


# ------------------------------- reference ----------------------------------

def reference_forward(x, params):
    conv_w, conv_b = params["conv"]
    y = jax.lax.conv_general_dilated(
        x, conv_w, window_strides=(1, 1), padding="VALID",
        dimension_numbers=("NCHW", "OIHW", "NCHW"),
        precision=jax.lax.Precision.HIGHEST)
    y = jnp.maximum(y + conv_b[None, :, None, None], 0.0)
    y = jax.lax.reduce_window(y, -jnp.inf, jax.lax.max,
                              (1, 1, POOL, POOL), (1, 1, POOL, POOL), "VALID")
    h = y.reshape(y.shape[0], -1)
    mlp = params["mlp"]
    for idx, (w, b) in enumerate(mlp):
        h = jnp.dot(h, w, precision=jax.lax.Precision.HIGHEST) + b
        if idx < len(mlp) - 1:
            h = jnp.maximum(h, 0.0)
    return h


# ---------------------------------- main -------------------------------------

if __name__ == "__main__":
    B, H, W = 2, 24, 24
    key = jax.random.PRNGKey(0)
    kx, kp = jax.random.split(key)
    x = jax.random.normal(kx, (B, C_IN, H, W), jnp.float32)

    OH, OW = H - KSIZE + 1, W - KSIZE + 1
    feat_in = C_OUT * (OH // POOL) * (OW // POOL)   # 160 (396010 at full scale)
    params = init_params(kp, feat_in)

    fwd = jax.jit(forward)
    out = fwd(x, params)
    out = jax.block_until_ready(out)

    ref = reference_forward(x, params)
    np.testing.assert_allclose(np.asarray(out), np.asarray(ref),
                               rtol=2e-2, atol=2e-2)
    print("KERNEL_OK")
</pallas_src>

<mosaic_0001>
module attributes {stable_mosaic.version = 11 : i64} {
  func.func @_fused_forward_kernel(%arg0: i32, %arg1: memref<5x128x128xbf16, #tpu.memory_space<vmem>>, %arg2: memref<128x128xbf16, #tpu.memory_space<vmem>>, %arg3: memref<1x128xf32, #tpu.memory_space<vmem>>, %arg4: memref<256x128xbf16, #tpu.memory_space<vmem>>, %arg5: memref<1x128xf32, #tpu.memory_space<vmem>>, %arg6: memref<6x128x128xbf16, #tpu.memory_space<vmem>>, %arg7: memref<6x1x128xf32, #tpu.memory_space<vmem>>, %arg8: memref<8x128xf32, #tpu.memory_space<vmem>>, %arg9: memref<128x128xf32, #tpu.memory_space<vmem>>) attributes {dimension_semantics = [#tpu.dimension_semantics<arbitrary>], iteration_bounds = array<i64: 5>, scalar_prefetch = 0 : i64, scratch_operands = 1 : i64, tpu.core_type = #tpu.core_type<tc>, window_params = [{transform_indices = @transform_0, window_bounds = array<i64: 5, 128, 128>}, {pipeline_mode = #tpu.pipeline_mode<synchronous>, transform_indices = @transform_1, window_bounds = array<i64: 128, 128>}, {pipeline_mode = #tpu.pipeline_mode<synchronous>, transform_indices = @transform_2, window_bounds = array<i64: 1, 128>}, {pipeline_mode = #tpu.pipeline_mode<synchronous>, transform_indices = @transform_3, window_bounds = array<i64: 256, 128>}, {pipeline_mode = #tpu.pipeline_mode<synchronous>, transform_indices = @transform_4, window_bounds = array<i64: 1, 128>}, {pipeline_mode = #tpu.pipeline_mode<synchronous>, transform_indices = @transform_5, window_bounds = array<i64: 6, 128, 128>}, {pipeline_mode = #tpu.pipeline_mode<synchronous>, transform_indices = @transform_6, window_bounds = array<i64: 6, 1, 128>}, {pipeline_mode = #tpu.pipeline_mode<synchronous>, transform_indices = @transform_7, window_bounds = array<i64: 8, 128>}]} {
    %c0 = arith.constant 0 : index
    %c0_0 = arith.constant 0 : index
    %0 = vector.load %arg2[%c0, %c0_0] : memref<128x128xbf16, #tpu.memory_space<vmem>>, vector<128x128xbf16>
    %c0_1 = arith.constant 0 : index
    %c0_2 = arith.constant 0 : index
    %c0_3 = arith.constant 0 : index
    %1 = vector.load %arg1[%c0_1, %c0_2, %c0_3] : memref<5x128x128xbf16, #tpu.memory_space<vmem>>, vector<1x128x128xbf16>
    %2 = vector.shape_cast %1 : vector<1x128x128xbf16> to vector<128x128xbf16>
    %cst = arith.constant dense<0.000000e+00> : vector<128x128xf32>
    %3 = tpu.matmul %2, %0, %cst {dimension_numbers = #tpu.dot_dimension_numbers<[1], [0], [0], [1], [0, 0, 1, 1], [], []>} : vector<128x128xbf16>, vector<128x128xbf16>, vector<128x128xf32> -> vector<128x128xf32>
    %c1 = arith.constant 1 : index
    %c0_4 = arith.constant 0 : index
    %c0_5 = arith.constant 0 : index
    %4 = vector.load %arg1[%c1, %c0_4, %c0_5] : memref<5x128x128xbf16, #tpu.memory_space<vmem>>, vector<1x128x128xbf16>
    %5 = vector.shape_cast %4 : vector<1x128x128xbf16> to vector<128x128xbf16>
    %cst_6 = arith.constant dense<0.000000e+00> : vector<128x128xf32>
    %6 = tpu.matmul %5, %0, %cst_6 {dimension_numbers = #tpu.dot_dimension_numbers<[1], [0], [0], [1], [0, 0, 1, 1], [], []>} : vector<128x128xbf16>, vector<128x128xbf16>, vector<128x128xf32> -> vector<128x128xf32>
    %7 = arith.maximumf %3, %6 : vector<128x128xf32>
    %c2 = arith.constant 2 : index
    %c0_7 = arith.constant 0 : index
    %c0_8 = arith.constant 0 : index
    %8 = vector.load %arg1[%c2, %c0_7, %c0_8] : memref<5x128x128xbf16, #tpu.memory_space<vmem>>, vector<1x128x128xbf16>
    %9 = vector.shape_cast %8 : vector<1x128x128xbf16> to vector<128x128xbf16>
    %cst_9 = arith.constant dense<0.000000e+00> : vector<128x128xf32>
    %10 = tpu.matmul %9, %0, %cst_9 {dimension_numbers = #tpu.dot_dimension_numbers<[1], [0], [0], [1], [0, 0, 1, 1], [], []>} : vector<128x128xbf16>, vector<128x128xbf16>, vector<128x128xf32> -> vector<128x128xf32>
    %11 = arith.maximumf %7, %10 : vector<128x128xf32>
    %c3 = arith.constant 3 : index
    %c0_10 = arith.constant 0 : index
    %c0_11 = arith.constant 0 : index
    %12 = vector.load %arg1[%c3, %c0_10, %c0_11] : memref<5x128x128xbf16, #tpu.memory_space<vmem>>, vector<1x128x128xbf16>
    %13 = vector.shape_cast %12 : vector<1x128x128xbf16> to vector<128x128xbf16>
    %cst_12 = arith.constant dense<0.000000e+00> : vector<128x128xf32>
    %14 = tpu.matmul %13, %0, %cst_12 {dimension_numbers = #tpu.dot_dimension_numbers<[1], [0], [0], [1], [0, 0, 1, 1], [], []>} : vector<128x128xbf16>, vector<128x128xbf16>, vector<128x128xf32> -> vector<128x128xf32>
    %15 = arith.maximumf %11, %14 : vector<128x128xf32>
    %c4 = arith.constant 4 : index
    %c0_13 = arith.constant 0 : index
    %c0_14 = arith.constant 0 : index
    %16 = vector.load %arg1[%c4, %c0_13, %c0_14] : memref<5x128x128xbf16, #tpu.memory_space<vmem>>, vector<1x128x128xbf16>
    %17 = vector.shape_cast %16 : vector<1x128x128xbf16> to vector<128x128xbf16>
    %cst_15 = arith.constant dense<0.000000e+00> : vector<128x128xf32>
    %18 = tpu.matmul %17, %0, %cst_15 {dimension_numbers = #tpu.dot_dimension_numbers<[1], [0], [0], [1], [0, 0, 1, 1], [], []>} : vector<128x128xbf16>, vector<128x128xbf16>, vector<128x128xf32> -> vector<128x128xf32>
    %19 = arith.maximumf %15, %18 : vector<128x128xf32>
    %c0_i32 = arith.constant 0 : i32
    %20 = arith.cmpi eq, %arg0, %c0_i32 : i32
    %21 = arith.extui %20 : i1 to i32
    %c0_i32_16 = arith.constant 0 : i32
    %22 = arith.cmpi ne, %21, %c0_i32_16 : i32
    scf.if %22 {
      %c0_20 = arith.constant 0 : index
      %c0_21 = arith.constant 0 : index
      %29 = vector.load %arg9[%c0_20, %c0_21] : memref<128x128xf32, #tpu.memory_space<vmem>>, vector<128x128xf32>
      tpu.vector_store %arg9[%c0_20, %c0_21], %19 {strides = array<i32>} : memref<128x128xf32, #tpu.memory_space<vmem>>, vector<128x128xf32>,
    } else {
    }
    %c0_i32_17 = arith.constant 0 : i32
    %23 = arith.cmpi ne, %arg0, %c0_i32_17 : i32
    %24 = arith.extui %23 : i1 to i32
    %c0_i32_18 = arith.constant 0 : i32
    %25 = arith.cmpi ne, %24, %c0_i32_18 : i32
    scf.if %25 {
      %c0_20 = arith.constant 0 : index
      %c0_21 = arith.constant 0 : index
      %29 = vector.load %arg9[%c0_20, %c0_21] : memref<128x128xf32, #tpu.memory_space<vmem>>, vector<128x128xf32>
      %30 = arith.maximumf %29, %19 : vector<128x128xf32>
      %c0_22 = arith.constant 0 : index
      %c0_23 = arith.constant 0 : index
      %31 = vector.load %arg9[%c0_22, %c0_23] : memref<128x128xf32, #tpu.memory_space<vmem>>, vector<128x128xf32>
      tpu.vector_store %arg9[%c0_22, %c0_23], %30 {strides = array<i32>} : memref<128x128xf32, #tpu.memory_space<vmem>>, vector<128x128xf32>,
    } else {
    }
    %c4_i32 = arith.constant 4 : i32
    %26 = arith.cmpi eq, %arg0, %c4_i32 : i32
    %27 = arith.extui %26 : i1 to i32
    %c0_i32_19 = arith.constant 0 : i32
    %28 = arith.cmpi ne, %27, %c0_i32_19 : i32
    scf.if %28 {
      %c0_20 = arith.constant 0 : index
      %c0_21 = arith.constant 0 : index
      %29 = vector.load %arg9[%c0_20, %c0_21] : memref<128x128xf32, #tpu.memory_space<vmem>>, vector<128x128xf32>
      %c0_22 = arith.constant 0 : index
      %c0_23 = arith.constant 0 : index
      %30 = vector.load %arg3[%c0_22, %c0_23] : memref<1x128xf32, #tpu.memory_space<vmem>>, vector<1x128xf32>
      %31 = vector.broadcast %30 : vector<1x128xf32> to vector<128x128xf32>
      %32 = arith.addf %29, %31 : vector<128x128xf32>
      %cst_24 = arith.constant 0.000000e+00 : f32
      %33 = vector.broadcast %cst_24 : f32 to vector<128x128xf32>
      %34 = arith.maximumf %32, %33 : vector<128x128xf32>
      %35 = vector.extract_strided_slice %34 {offsets = [0, 0], sizes = [8, 16], strides = [1, 1]} : vector<128x128xf32> to vector<8x16xf32>
      %36 = vector.extract_strided_slice %34 {offsets = [8, 0], sizes = [8, 16], strides = [1, 1]} : vector<128x128xf32> to vector<8x16xf32>
      %37 = vector.extract_strided_slice %34 {offsets = [16, 0], sizes = [8, 16], strides = [1, 1]} : vector<128x128xf32> to vector<8x16xf32>
      %38 = vector.extract_strided_slice %34 {offsets = [24, 0], sizes = [8, 16], strides = [1, 1]} : vector<128x128xf32> to vector<8x16xf32>
      %39 = vector.extract_strided_slice %34 {offsets = [32, 0], sizes = [8, 16], strides = [1, 1]} : vector<128x128xf32> to vector<8x16xf32>
      %40 = vector.extract_strided_slice %34 {offsets = [40, 0], sizes = [8, 16], strides = [1, 1]} : vector<128x128xf32> to vector<8x16xf32>
      %41 = vector.extract_strided_slice %34 {offsets = [48, 0], sizes = [8, 16], strides = [1, 1]} : vector<128x128xf32> to vector<8x16xf32>
      %42 = vector.extract_strided_slice %34 {offsets = [56, 0], sizes = [8, 16], strides = [1, 1]} : vector<128x128xf32> to vector<8x16xf32>
      %43 = vector.extract_strided_slice %34 {offsets = [64, 0], sizes = [8, 16], strides = [1, 1]} : vector<128x128xf32> to vector<8x16xf32>
      %44 = vector.extract_strided_slice %34 {offsets = [72, 0], sizes = [8, 16], strides = [1, 1]} : vector<128x128xf32> to vector<8x16xf32>
      %45 = vector.extract_strided_slice %34 {offsets = [80, 0], sizes = [8, 16], strides = [1, 1]} : vector<128x128xf32> to vector<8x16xf32>
      %46 = vector.extract_strided_slice %34 {offsets = [88, 0], sizes = [8, 16], strides = [1, 1]} : vector<128x128xf32> to vector<8x16xf32>
      %47 = vector.extract_strided_slice %34 {offsets = [96, 0], sizes = [8, 16], strides = [1, 1]} : vector<128x128xf32> to vector<8x16xf32>
      %48 = vector.extract_strided_slice %34 {offsets = [104, 0], sizes = [8, 16], strides = [1, 1]} : vector<128x128xf32> to vector<8x16xf32>
      %49 = vector.extract_strided_slice %34 {offsets = [112, 0], sizes = [8, 16], strides = [1, 1]} : vector<128x128xf32> to vector<8x16xf32>
      %50 = vector.extract_strided_slice %34 {offsets = [120, 0], sizes = [8, 16], strides = [1, 1]} : vector<128x128xf32> to vector<8x16xf32>
      %51 = tpu.concatenate %35, %36, %37, %38, %39, %40, %41, %42, %43, %44, %45, %46, %47, %48, %49, %50 in 1 : vector<8x16xf32>, vector<8x16xf32>, vector<8x16xf32>, vector<8x16xf32>, vector<8x16xf32>, vector<8x16xf32>, vector<8x16xf32>, vector<8x16xf32>, vector<8x16xf32>, vector<8x16xf32>, vector<8x16xf32>, vector<8x16xf32>, vector<8x16xf32>, vector<8x16xf32>, vector<8x16xf32>, vector<8x16xf32> -> vector<8x256xf32>
      %52 = arith.truncf %51 : vector<8x256xf32> to vector<8x256xbf16>
      %c0_25 = arith.constant 0 : index
      %c0_26 = arith.constant 0 : index
      %53 = vector.load %arg4[%c0_25, %c0_26] : memref<256x128xbf16, #tpu.memory_space<vmem>>, vector<256x128xbf16>
      %cst_27 = arith.constant dense<0.000000e+00> : vector<8x128xf32>
      %54 = tpu.matmul %52, %53, %cst_27 {dimension_numbers = #tpu.dot_dimension_numbers<[1], [0], [0], [1], [0, 0, 1, 1], [], []>} : vector<8x256xbf16>, vector<256x128xbf16>, vector<8x128xf32> -> vector<8x128xf32>
      %c0_28 = arith.constant 0 : index
      %c0_29 = arith.constant 0 : index
      %55 = vector.load %arg5[%c0_28, %c0_29] : memref<1x128xf32, #tpu.memory_space<vmem>>, vector<1x128xf32>
      %56 = vector.broadcast %55 : vector<1x128xf32> to vector<8x128xf32>
      %57 = arith.addf %54, %56 : vector<8x128xf32>
      %cst_30 = arith.constant 0.000000e+00 : f32
      %58 = vector.broadcast %cst_30 : f32 to vector<8x128xf32>
      %59 = arith.maximumf %57, %58 : vector<8x128xf32>
      %60 = arith.truncf %59 : vector<8x128xf32> to vector<8x128xbf16>
      %c0_31 = arith.constant 0 : index
      %c0_32 = arith.constant 0 : index
      %c0_33 = arith.constant 0 : index
      %61 = vector.load %arg6[%c0_31, %c0_32, %c0_33] : memref<6x128x128xbf16, #tpu.memory_space<vmem>>, vector<1x128x128xbf16>
      %62 = vector.shape_cast %61 : vector<1x128x128xbf16> to vector<128x128xbf16>
      %cst_34 = arith.constant dense<0.000000e+00> : vector<8x128xf32>
      %63 = tpu.matmul %60, %62, %cst_34 {dimension_numbers = #tpu.dot_dimension_numbers<[1], [0], [0], [1], [0, 0, 1, 1], [], []>} : vector<8x128xbf16>, vector<128x128xbf16>, vector<8x128xf32> -> vector<8x128xf32>
      %c0_35 = arith.constant 0 : index
      %c0_36 = arith.constant 0 : index
      %c0_37 = arith.constant 0 : index
      %64 = vector.load %arg7[%c0_35, %c0_36, %c0_37] : memref<6x1x128xf32, #tpu.memory_space<vmem>>, vector<1x1x128xf32>
      %65 = vector.shape_cast %64 : vector<1x1x128xf32> to vector<1x128xf32>
      %66 = vector.broadcast %65 : vector<1x128xf32> to vector<8x128xf32>
      %67 = arith.addf %63, %66 : vector<8x128xf32>
      %cst_38 = arith.constant 0.000000e+00 : f32
      %68 = vector.broadcast %cst_38 : f32 to vector<8x128xf32>
      %69 = arith.maximumf %67, %68 : vector<8x128xf32>
      %70 = arith.truncf %69 : vector<8x128xf32> to vector<8x128xbf16>
      %c1_39 = arith.constant 1 : index
      %c0_40 = arith.constant 0 : index
      %c0_41 = arith.constant 0 : index
      %71 = vector.load %arg6[%c1_39, %c0_40, %c0_41] : memref<6x128x128xbf16, #tpu.memory_space<vmem>>, vector<1x128x128xbf16>
      %72 = vector.shape_cast %71 : vector<1x128x128xbf16> to vector<128x128xbf16>
      %cst_42 = arith.constant dense<0.000000e+00> : vector<8x128xf32>
      %73 = tpu.matmul %70, %72, %cst_42 {dimension_numbers = #tpu.dot_dimension_numbers<[1], [0], [0], [1], [0, 0, 1, 1], [], []>} : vector<8x128xbf16>, vector<128x128xbf16>, vector<8x128xf32> -> vector<8x128xf32>
      %c1_43 = arith.constant 1 : index
      %c0_44 = arith.constant 0 : index
      %c0_45 = arith.constant 0 : index
      %74 = vector.load %arg7[%c1_43, %c0_44, %c0_45] : memref<6x1x128xf32, #tpu.memory_space<vmem>>, vector<1x1x128xf32>
      %75 = vector.shape_cast %74 : vector<1x1x128xf32> to vector<1x128xf32>
      %76 = vector.broadcast %75 : vector<1x128xf32> to vector<8x128xf32>
      %77 = arith.addf %73, %76 : vector<8x128xf32>
      %cst_46 = arith.constant 0.000000e+00 : f32
      %78 = vector.broadcast %cst_46 : f32 to vector<8x128xf32>
      %79 = arith.maximumf %77, %78 : vector<8x128xf32>
      %80 = arith.truncf %79 : vector<8x128xf32> to vector<8x128xbf16>
      %c2_47 = arith.constant 2 : index
      %c0_48 = arith.constant 0 : index
      %c0_49 = arith.constant 0 : index
      %81 = vector.load %arg6[%c2_47, %c0_48, %c0_49] : memref<6x128x128xbf16, #tpu.memory_space<vmem>>, vector<1x128x128xbf16>
      %82 = vector.shape_cast %81 : vector<1x128x128xbf16> to vector<128x128xbf16>
      %cst_50 = arith.constant dense<0.000000e+00> : vector<8x128xf32>
      %83 = tpu.matmul %80, %82, %cst_50 {dimension_numbers = #tpu.dot_dimension_numbers<[1], [0], [0], [1], [0, 0, 1, 1], [], []>} : vector<8x128xbf16>, vector<128x128xbf16>, vector<8x128xf32> -> vector<8x128xf32>
      %c2_51 = arith.constant 2 : index
      %c0_52 = arith.constant 0 : index
      %c0_53 = arith.constant 0 : index
      %84 = vector.load %arg7[%c2_51, %c0_52, %c0_53] : memref<6x1x128xf32, #tpu.memory_space<vmem>>, vector<1x1x128xf32>
      %85 = vector.shape_cast %84 : vector<1x1x128xf32> to vector<1x128xf32>
      %86 = vector.broadcast %85 : vector<1x128xf32> to vector<8x128xf32>
      %87 = arith.addf %83, %86 : vector<8x128xf32>
      %cst_54 = arith.constant 0.000000e+00 : f32
      %88 = vector.broadcast %cst_54 : f32 to vector<8x128xf32>
      %89 = arith.maximumf %87, %88 : vector<8x128xf32>
      %90 = arith.truncf %89 : vector<8x128xf32> to vector<8x128xbf16>
      %c3_55 = arith.constant 3 : index
      %c0_56 = arith.constant 0 : index
      %c0_57 = arith.constant 0 : index
      %91 = vector.load %arg6[%c3_55, %c0_56, %c0_57] : memref<6x128x128xbf16, #tpu.memory_space<vmem>>, vector<1x128x128xbf16>
      %92 = vector.shape_cast %91 : vector<1x128x128xbf16> to vector<128x128xbf16>
      %cst_58 = arith.constant dense<0.000000e+00> : vector<8x128xf32>
      %93 = tpu.matmul %90, %92, %cst_58 {dimension_numbers = #tpu.dot_dimension_numbers<[1], [0], [0], [1], [0, 0, 1, 1], [], []>} : vector<8x128xbf16>, vector<128x128xbf16>, vector<8x128xf32> -> vector<8x128xf32>
      %c3_59 = arith.constant 3 : index
      %c0_60 = arith.constant 0 : index
      %c0_61 = arith.constant 0 : index
      %94 = vector.load %arg7[%c3_59, %c0_60, %c0_61] : memref<6x1x128xf32, #tpu.memory_space<vmem>>, vector<1x1x128xf32>
      %95 = vector.shape_cast %94 : vector<1x1x128xf32> to vector<1x128xf32>
      %96 = vector.broadcast %95 : vector<1x128xf32> to vector<8x128xf32>
      %97 = arith.addf %93, %96 : vector<8x128xf32>
      %cst_62 = arith.constant 0.000000e+00 : f32
      %98 = vector.broadcast %cst_62 : f32 to vector<8x128xf32>
      %99 = arith.maximumf %97, %98 : vector<8x128xf32>
      %100 = arith.truncf %99 : vector<8x128xf32> to vector<8x128xbf16>
      %c4_63 = arith.constant 4 : index
      %c0_64 = arith.constant 0 : index
      %c0_65 = arith.constant 0 : index
      %101 = vector.load %arg6[%c4_63, %c0_64, %c0_65] : memref<6x128x128xbf16, #tpu.memory_space<vmem>>, vector<1x128x128xbf16>
      %102 = vector.shape_cast %101 : vector<1x128x128xbf16> to vector<128x128xbf16>
      %cst_66 = arith.constant dense<0.000000e+00> : vector<8x128xf32>
      %103 = tpu.matmul %100, %102, %cst_66 {dimension_numbers = #tpu.dot_dimension_numbers<[1], [0], [0], [1], [0, 0, 1, 1], [], []>} : vector<8x128xbf16>, vector<128x128xbf16>, vector<8x128xf32> -> vector<8x128xf32>
      %c4_67 = arith.constant 4 : index
      %c0_68 = arith.constant 0 : index
      %c0_69 = arith.constant 0 : index
      %104 = vector.load %arg7[%c4_67, %c0_68, %c0_69] : memref<6x1x128xf32, #tpu.memory_space<vmem>>, vector<1x1x128xf32>
      %105 = vector.shape_cast %104 : vector<1x1x128xf32> to vector<1x128xf32>
      %106 = vector.broadcast %105 : vector<1x128xf32> to vector<8x128xf32>
      %107 = arith.addf %103, %106 : vector<8x128xf32>
      %cst_70 = arith.constant 0.000000e+00 : f32
      %108 = vector.broadcast %cst_70 : f32 to vector<8x128xf32>
      %109 = arith.maximumf %107, %108 : vector<8x128xf32>
      %110 = arith.truncf %109 : vector<8x128xf32> to vector<8x128xbf16>
      %c5 = arith.constant 5 : index
      %c0_71 = arith.constant 0 : index
      %c0_72 = arith.constant 0 : index
      %111 = vector.load %arg6[%c5, %c0_71, %c0_72] : memref<6x128x128xbf16, #tpu.memory_space<vmem>>, vector<1x128x128xbf16>
      %112 = vector.shape_cast %111 : vector<1x128x128xbf16> to vector<128x128xbf16>
      %cst_73 = arith.constant dense<0.000000e+00> : vector<8x128xf32>
      %113 = tpu.matmul %110, %112, %cst_73 {dimension_numbers = #tpu.dot_dimension_numbers<[1], [0], [0], [1], [0, 0, 1, 1], [], []>} : vector<8x128xbf16>, vector<128x128xbf16>, vector<8x128xf32> -> vector<8x128xf32>
      %c5_74 = arith.constant 5 : index
      %c0_75 = arith.constant 0 : index
      %c0_76 = arith.constant 0 : index
      %114 = vector.load %arg7[%c5_74, %c0_75, %c0_76] : memref<6x1x128xf32, #tpu.memory_space<vmem>>, vector<1x1x128xf32>
      %115 = vector.shape_cast %114 : vector<1x1x128xf32> to vector<1x128xf32>
      %116 = vector.broadcast %115 : vector<1x128xf32> to vector<8x128xf32>
      %117 = arith.addf %113, %116 : vector<8x128xf32>
      %c0_77 = arith.constant 0 : index
      %c0_78 = arith.constant 0 : index
      %118 = vector.load %arg8[%c0_77, %c0_78] : memref<8x128xf32, #tpu.memory_space<vmem>>, vector<8x128xf32>
      tpu.vector_store %arg8[%c0_77, %c0_78], %117 {strides = array<i32>} : memref<8x128xf32, #tpu.memory_space<vmem>>, vector<8x128xf32>,
    } else {
    }
    return
  }
  func.func @transform_0(%arg0: i32) -> (i32, i32, i32) {
    %c0_i32 = arith.constant 0 : i32
    %c0_i32_0 = arith.constant 0 : i32
    %c0_i32_1 = arith.constant 0 : i32
    return %arg0, %c0_i32, %c0_i32_0 : i32, i32, i32
  }
  func.func @transform_1(%arg0: i32) -> (i32, i32) {
    %c0_i32 = arith.constant 0 : i32
    %c0_i32_0 = arith.constant 0 : i32
    %c0_i32_1 = arith.constant 0 : i32
    return %c0_i32, %c0_i32_0 : i32, i32
  }
  func.func @transform_2(%arg0: i32) -> (i32, i32) {
    %c0_i32 = arith.constant 0 : i32
    %c0_i32_0 = arith.constant 0 : i32
    %c0_i32_1 = arith.constant 0 : i32
    return %c0_i32, %c0_i32_0 : i32, i32
  }
  func.func @transform_3(%arg0: i32) -> (i32, i32) {
    %c0_i32 = arith.constant 0 : i32
    %c0_i32_0 = arith.constant 0 : i32
    %c0_i32_1 = arith.constant 0 : i32
    return %c0_i32, %c0_i32_0 : i32, i32
  }
  func.func @transform_4(%arg0: i32) -> (i32, i32) {
    %c0_i32 = arith.constant 0 : i32
    %c0_i32_0 = arith.constant 0 : i32
    %c0_i32_1 = arith.constant 0 : i32
    return %c0_i32, %c0_i32_0 : i32, i32
  }
  func.func @transform_5(%arg0: i32) -> (i32, i32, i32) {
    %c0_i32 = arith.constant 0 : i32
    %c0_i32_0 = arith.constant 0 : i32
    %c0_i32_1 = arith.constant 0 : i32
    %c0_i32_2 = arith.constant 0 : i32
    return %c0_i32, %c0_i32_0, %c0_i32_1 : i32, i32, i32
  }
  func.func @transform_6(%arg0: i32) -> (i32, i32, i32) {
    %c0_i32 = arith.constant 0 : i32
    %c0_i32_0 = arith.constant 0 : i32
    %c0_i32_1 = arith.constant 0 : i32
    %c0_i32_2 = arith.constant 0 : i32
    return %c0_i32, %c0_i32_0, %c0_i32_1 : i32, i32, i32
  }
  func.func @transform_7(%arg0: i32) -> (i32, i32) {
    %c0_i32 = arith.constant 0 : i32
    %c0_i32_0 = arith.constant 0 : i32
    %c0_i32_1 = arith.constant 0 : i32
    return %c0_i32, %c0_i32_0 : i32, i32
  }
}

</mosaic_0001>

<bundles_post_ra>
// kernel: forward.1
= control target key start
LH: loop header
LB: loop body
LE: loop exit
PB: predicated region body
PF: predicated region fallthrough
CT: control target
= control target key end

     0   :  { %s3263_s24 = smov 0   ;;  %s3935_s0 = inlined_call_operand.vmem [shape: bf16[25,128,128], index: 0, kind: input, shape index: {}]   ;;  %s3936_s1 = inlined_call_operand.vmem [shape: bf16[128,128], index: 1, kind: input, shape index: {}]   ;;  %s3937_s2 = inlined_call_operand.vmem [shape: f32[1,128], index: 2, kind: input, shape index: {}]   ;;  %s3938_s3 = inlined_call_operand.vmem [shape: bf16[256,128], index: 3, kind: input, shape index: {}]   ;;  %s3939_s4 = inlined_call_operand.vmem [shape: f32[1,128], index: 4, kind: input, shape index: {}]   ;;  %s3940_s5 = inlined_call_operand.vmem [shape: bf16[6,128,128], index: 5, kind: input, shape index: {}]   ;;  %s3941_s6 = inlined_call_operand.vmem [shape: f32[6,1,128], index: 6, kind: input, shape index: {}]   ;;  %s3942_s7 = inlined_call_operand.vmem [shape: f32[8,128], index: 7, kind: output, shape index: {}]  }
   0x1 LB: > { %s3269_s25 = sadd.s32 4294967295, %s3212_s24   ;;  %p2312_p0 = scmp.ge.s32.totalorder %s3212_s24, 1  ;;  %s3212_s24 = sphi %s3263_s24, %s17_s24  }
   0x2   : > { %p234_p1 = scmp.lt.s32.totalorder %s3212_s24, 6 }
   0x4   : > { %p235_p2 = pnand %p2312_p0, %p234_p1 }
   0x6   : > { %238 = sbr.rel (%p235_p2) target bundleno = 1888 (0x760), region = 48 }
   0xb   : > { %v3276_v0 = vld [vmem:[%s3936_s1 + $0x38] sm:$0xff]   ;;  %s262_s28 = smul.u32 5, %s3269_s25  ;;  %v3282_v1 = vld [vmem:[%s3936_s1 + $0x30] sm:$0xff]   ;;  %v3293_v2 = vld [vmem:[%s3936_s1 + $0x28] sm:$0xff]   ;;  %p2427_p4 = scmp.ne.s32.totalorder %s3269_s25, 0 }
   0xc   : > { %2746 = vmatprep.subr.bf16.mxu0 %v3276_v0  ;;  %2778 = vmatprep.subr.bf16.mxu1 %v3276_v0  ;;  %v3300_v3 = vld [vmem:[%s3936_s1 + $0x20] sm:$0xff]   ;;  %v3318_v6 = vld [vmem:[%s3936_s1 + $0x18] sm:$0xff]   ;;  %v3327_v7 = vld [vmem:[%s3936_s1 + $0x10] sm:$0xff]  }
   0xd   : > { %p263_p3 = scmp.lt.s32.totalorder %s262_s28, 24  ;;  %2747 = vmatpush3.bf16.msra.mxu0 %v3276_v0  ;;  %2779 = vmatpush3.bf16.msra.mxu1 %v3276_v0  ;;  %v3336_v8 = vld [vmem:[%s3936_s1 + $0x8] sm:$0xff]   ;;  %v3345_v9 = vld [vmem:[%s3936_s1] sm:$0xff]  }
   0xe   : > { %2748 = vmatprep.subr.bf16.mxu0 %v3282_v1  ;;  %2780 = vmatprep.subr.bf16.mxu1 %v3282_v1 }
   0xf   : > { %s3964_s28 = smov (!%p263_p3, %s262_s28), 24 }
  0x10   : > { %s2589_s10 = sshll.u32 %s3964_s28, 6 }
  0x11   : > { %2749 = vmatpush3.bf16.msra.mxu0 %v3282_v1  ;;  %2781 = vmatpush3.bf16.msra.mxu1 %v3282_v1  ;;  %s3305_s15 = scalar_lea.vmem %s3935_s0, %s2589_s10 }
  0x12   : > { %2750 = vmatprep.subr.bf16.mxu0 %v3293_v2  ;;  %2782 = vmatprep.subr.bf16.mxu1 %v3293_v2  ;;  %v3067_v4 = vld [vmem:[%s3305_s15] sm:$0xff]   ;;  %v3069_v10 = vld [vmem:[%s3305_s15 + $0x8] sm:$0xff]   ;;  %v3071_v12 = vld [vmem:[%s3305_s15 + $0x10] sm:$0xff]  }
  0x13   : > { %v3068_v5 = vld [vmem:[%s3305_s15 + $0x40] sm:$0xff]   ;;  %2762 = vmatprep.mubr.bf16.mxu0 %v3067_v4  ;;  %v3070_v11 = vld [vmem:[%s3305_s15 + $0x48] sm:$0xff]   ;;  %v3072_v13 = vld [vmem:[%s3305_s15 + $0x50] sm:$0xff]  }
  0x14   : > { %2794 = vmatprep.mubr.bf16.mxu1 %v3068_v5  ;;  %v3073_v14 = vld [vmem:[%s3305_s15 + $0x18] sm:$0xff]   ;;  %v3075_v16 = vld [vmem:[%s3305_s15 + $0x20] sm:$0xff]   ;;  %v3077_v18 = vld [vmem:[%s3305_s15 + $0x28] sm:$0xff]  }
  0x15   : > { %2751 = vmatpush3.bf16.msra.mxu0 %v3293_v2  ;;  %2783 = vmatpush3.bf16.msra.mxu1 %v3293_v2  ;;  %v3074_v15 = vld [vmem:[%s3305_s15 + $0x58] sm:$0xff]   ;;  %v3076_v17 = vld [vmem:[%s3305_s15 + $0x60] sm:$0xff]   ;;  %v3078_v19 = vld [vmem:[%s3305_s15 + $0x68] sm:$0xff]  }
  0x16   : > { %2752 = vmatprep.subr.bf16.mxu0 %v3300_v3  ;;  %2784 = vmatprep.subr.bf16.mxu1 %v3300_v3  ;;  %v3079_v20 = vld [vmem:[%s3305_s15 + $0x30] sm:$0xff]   ;;  %v3081_v22 = vld [vmem:[%s3305_s15 + $0x38] sm:$0xff]   ;;  %v3083_v24 = vld [vmem:[%s3305_s15 + $0x80] sm:$0xff]  }
  0x17   : > { %v3080_v21 = vld [vmem:[%s3305_s15 + $0x70] sm:$0xff]   ;;  %v3082_v23 = vld [vmem:[%s3305_s15 + $0x78] sm:$0xff]   ;;  %v3084_v25 = vld [vmem:[%s3305_s15 + $0xc0] sm:$0xff]  }
  0x18   : > { %v3085_v26 = vld [vmem:[%s3305_s15 + $0x88] sm:$0xff]   ;;  %v3087_v28 = vld [vmem:[%s3305_s15 + $0x90] sm:$0xff]   ;;  %v3089_v30 = vld [vmem:[%s3305_s15 + $0x98] sm:$0xff]  }
  0x19   : > { %2753 = vmatpush3.bf16.msra.mxu0 %v3300_v3  ;;  %2785 = vmatpush3.bf16.msra.mxu1 %v3300_v3  ;;  %v3086_v27 = vld [vmem:[%s3305_s15 + $0xc8] sm:$0xff]   ;;  %v3088_v29 = vld [vmem:[%s3305_s15 + $0xd0] sm:$0xff]   ;;  %v3090_v31 = vld [vmem:[%s3305_s15 + $0xd8] sm:$0xff]  }
  0x1a   : > { %2754 = vmatprep.subr.bf16.mxu0 %v3318_v6  ;;  %2786 = vmatprep.subr.bf16.mxu1 %v3318_v6  ;;  %v3091_v32 = vld [vmem:[%s3305_s15 + $0xa0] sm:$0xff]   ;;  %v3093_v34 = vld [vmem:[%s3305_s15 + $0xa8] sm:$0xff]   ;;  %v3095_v36 = vld [vmem:[%s3305_s15 + $0xb0] sm:$0xff]  }
  0x1b   : > { %v3092_v33 = vld [vmem:[%s3305_s15 + $0xe0] sm:$0xff]   ;;  %v3094_v35 = vld [vmem:[%s3305_s15 + $0xe8] sm:$0xff]   ;;  %v3096_v37 = vld [vmem:[%s3305_s15 + $0xf0] sm:$0xff]  }
  0x1c   : > { %v3097_v38 = vld [vmem:[%s3305_s15 + $0xb8] sm:$0xff]   ;;  %v3099_v40 = vld [vmem:[%s3305_s15 + $0x100] sm:$0xff]   ;;  %v3101_v42 = vld [vmem:[%s3305_s15 + $0x108] sm:$0xff]  }
  0x1d   : > { %2755 = vmatpush3.bf16.msra.mxu0 %v3318_v6  ;;  %2787 = vmatpush3.bf16.msra.mxu1 %v3318_v6  ;;  %v3098_v39 = vld [vmem:[%s3305_s15 + $0xf8] sm:$0xff]   ;;  %v3100_v41 = vld [vmem:[%s3305_s15 + $0x120] sm:$0xff]   ;;  %v3102_v43 = vld [vmem:[%s3305_s15 + $0x128] sm:$0xff]  }
  0x1e   : > { %2756 = vmatprep.subr.bf16.mxu0 %v3327_v7  ;;  %2788 = vmatprep.subr.bf16.mxu1 %v3327_v7  ;;  %v3103_v44 = vld [vmem:[%s3305_s15 + $0x110] sm:$0xff]   ;;  %v3105_v46 = vld [vmem:[%s3305_s15 + $0x118] sm:$0xff]  }
  0x1f   : > { %v3104_v45 = vld [vmem:[%s3305_s15 + $0x130] sm:$0xff]   ;;  %v3106_v47 = vld [vmem:[%s3305_s15 + $0x138] sm:$0xff]  }
  0x21   : > { %2757 = vmatpush3.bf16.msra.mxu0 %v3327_v7  ;;  %2789 = vmatpush3.bf16.msra.mxu1 %v3327_v7 }
  0x22   : > { %2758 = vmatprep.subr.bf16.mxu0 %v3336_v8  ;;  %2790 = vmatprep.subr.bf16.mxu1 %v3336_v8 }
  0x25   : > { %2759 = vmatpush3.bf16.msra.mxu0 %v3336_v8  ;;  %2791 = vmatpush3.bf16.msra.mxu1 %v3336_v8 }
  0x26   : > { %2760 = vmatprep.subr.bf16.mxu0 %v3345_v9  ;;  %2792 = vmatprep.subr.bf16.mxu1 %v3345_v9 }
  0x29   : > { %2761 = vmatpush3.bf16.msra.mxu0 %v3345_v9  ;;  %2793 = vmatpush3.bf16.msra.mxu1 %v3345_v9 }
  0x2a   : > { %2810 = vmatprep.subr.bf16.mxu0 %v3276_v0  ;;  %2842 = vmatprep.subr.bf16.mxu1 %v3276_v0 }
  0x2c   : > { %2763 = vmatmul.mubr.bf16.vlgmr.msra.gmra.mxu0 %v3069_v10  ;;  %2795 = vmatmul.mubr.bf16.vlgmr.msra.gmra.mxu1 %v3070_v11 }
  0x2d   : > { %2811 = vmatpush3.bf16.msra.mxu0 %v3276_v0  ;;  %2843 = vmatpush3.bf16.msra.mxu1 %v3276_v0 }
  0x2e   : > { %2812 = vmatprep.subr.bf16.mxu0 %v3282_v1  ;;  %2844 = vmatprep.subr.bf16.mxu1 %v3282_v1 }
  0x2f   : > { %2766 = vmatprep.mubr.bf16.mxu0 %v3071_v12  ;;  %2798 = vmatprep.mubr.bf16.mxu1 %v3072_v13 }
  0x31   : > { %2813 = vmatpush3.bf16.msra.mxu0 %v3282_v1  ;;  %2845 = vmatpush3.bf16.msra.mxu1 %v3282_v1 }
  0x32   : > { %2814 = vmatprep.subr.bf16.mxu0 %v3293_v2  ;;  %2846 = vmatprep.subr.bf16.mxu1 %v3293_v2 }
  0x34   : > { %2767 = vmatmul.mubr.bf16.gmra.mxu0 %v3073_v14  ;;  %2799 = vmatmul.mubr.bf16.gmra.mxu1 %v3074_v15 }
  0x35   : > { %2815 = vmatpush3.bf16.msra.mxu0 %v3293_v2  ;;  %2847 = vmatpush3.bf16.msra.mxu1 %v3293_v2 }
  0x36   : > { %2816 = vmatprep.subr.bf16.mxu0 %v3300_v3  ;;  %2848 = vmatprep.subr.bf16.mxu1 %v3300_v3 }
  0x37   : > { %2770 = vmatprep.mubr.bf16.mxu0 %v3075_v16  ;;  %2802 = vmatprep.mubr.bf16.mxu1 %v3076_v17 }
  0x39   : > { %2817 = vmatpush3.bf16.msra.mxu0 %v3300_v3  ;;  %2849 = vmatpush3.bf16.msra.mxu1 %v3300_v3 }
  0x3a   : > { %2818 = vmatprep.subr.bf16.mxu0 %v3318_v6  ;;  %2850 = vmatprep.subr.bf16.mxu1 %v3318_v6 }
  0x3c   : > { %2771 = vmatmul.mubr.bf16.gmra.mxu0 %v3077_v18  ;;  %2803 = vmatmul.mubr.bf16.gmra.mxu1 %v3078_v19 }
  0x3d   : > { %2819 = vmatpush3.bf16.msra.mxu0 %v3318_v6  ;;  %2851 = vmatpush3.bf16.msra.mxu1 %v3318_v6 }
  0x3e   : > { %2820 = vmatprep.subr.bf16.mxu0 %v3327_v7  ;;  %2852 = vmatprep.subr.bf16.mxu1 %v3327_v7 }
  0x3f   : > { %2774 = vmatprep.mubr.bf16.mxu0 %v3079_v20  ;;  %2806 = vmatprep.mubr.bf16.mxu1 %v3080_v21 }
  0x41   : > { %2821 = vmatpush3.bf16.msra.mxu0 %v3327_v7  ;;  %2853 = vmatpush3.bf16.msra.mxu1 %v3327_v7 }
  0x42   : > { %2822 = vmatprep.subr.bf16.mxu0 %v3336_v8  ;;  %2854 = vmatprep.subr.bf16.mxu1 %v3336_v8 }
  0x44   : > { %2775 = vmatmul.mubr.bf16.gmra.mxu0 %v3081_v22  ;;  %2807 = vmatmul.mubr.bf16.gmra.mxu1 %v3082_v23 }
  0x45   : > { %2823 = vmatpush3.bf16.msra.mxu0 %v3336_v8  ;;  %2855 = vmatpush3.bf16.msra.mxu1 %v3336_v8 }
  0x46   : > { %2824 = vmatprep.subr.bf16.mxu0 %v3345_v9  ;;  %2856 = vmatprep.subr.bf16.mxu1 %v3345_v9 }
  0x47   : > { %2826 = vmatprep.mubr.bf16.mxu0 %v3083_v24  ;;  %2858 = vmatprep.mubr.bf16.mxu1 %v3084_v25 }
  0x49   : > { %2825 = vmatpush3.bf16.msra.mxu0 %v3345_v9  ;;  %2857 = vmatpush3.bf16.msra.mxu1 %v3345_v9 }
  0x4a   : > { %2874 = vmatprep.subr.bf16.mxu0 %v3276_v0  ;;  %3026 = vmatprep.subr.bf16.mxu1 %v3276_v0 }
  0x4c   : > { %2827 = vmatmul.mubr.bf16.vlgmr.msra.gmra.mxu0 %v3085_v26  ;;  %2859 = vmatmul.mubr.bf16.vlgmr.msra.gmra.mxu1 %v3086_v27 }
  0x4d   : > { %2875 = vmatpush3.bf16.msra.mxu0 %v3276_v0  ;;  %3034 = vmatpush3.bf16.msra.mxu1 %v3276_v0 }
  0x4e   : > { %2876 = vmatprep.subr.bf16.mxu0 %v3282_v1  ;;  %3027 = vmatprep.subr.bf16.mxu1 %v3282_v1 }
  0x4f   : > { %2830 = vmatprep.mubr.bf16.mxu0 %v3087_v28  ;;  %2862 = vmatprep.mubr.bf16.mxu1 %v3088_v29 }
  0x51   : > { %2877 = vmatpush3.bf16.msra.mxu0 %v3282_v1  ;;  %3035 = vmatpush3.bf16.msra.mxu1 %v3282_v1 }
  0x52   : > { %2878 = vmatprep.subr.bf16.mxu0 %v3293_v2  ;;  %3028 = vmatprep.subr.bf16.mxu1 %v3293_v2 }
  0x54   : > { %2831 = vmatmul.mubr.bf16.gmra.mxu0 %v3089_v30  ;;  %2863 = vmatmul.mubr.bf16.gmra.mxu1 %v3090_v31 }
  0x55   : > { %2879 = vmatpush3.bf16.msra.mxu0 %v3293_v2  ;;  %3036 = vmatpush3.bf16.msra.mxu1 %v3293_v2 }
  0x56   : > { %2880 = vmatprep.subr.bf16.mxu0 %v3300_v3  ;;  %3029 = vmatprep.subr.bf16.mxu1 %v3300_v3 }
  0x57   : > { %2834 = vmatprep.mubr.bf16.mxu0 %v3091_v32  ;;  %2866 = vmatprep.mubr.bf16.mxu1 %v3092_v33 }
  0x59   : > { %2881 = vmatpush3.bf16.msra.mxu0 %v3300_v3  ;;  %3037 = vmatpush3.bf16.msra.mxu1 %v3300_v3 }
  0x5a   : > { %2882 = vmatprep.subr.bf16.mxu0 %v3318_v6  ;;  %3030 = vmatprep.subr.bf16.mxu1 %v3318_v6 }
  0x5c   : > { %2835 = vmatmul.mubr.bf16.gmra.mxu0 %v3093_v34  ;;  %2867 = vmatmul.mubr.bf16.gmra.mxu1 %v3094_v35 }
  0x5d   : > { %2883 = vmatpush3.bf16.msra.mxu0 %v3318_v6  ;;  %3038 = vmatpush3.bf16.msra.mxu1 %v3318_v6 }
  0x5e   : > { %2884 = vmatprep.subr.bf16.mxu0 %v3327_v7  ;;  %3031 = vmatprep.subr.bf16.mxu1 %v3327_v7 }
  0x5f   : > { %2838 = vmatprep.mubr.bf16.mxu0 %v3095_v36  ;;  %2870 = vmatprep.mubr.bf16.mxu1 %v3096_v37 }
  0x61   : > { %2885 = vmatpush3.bf16.msra.mxu0 %v3327_v7  ;;  %3039 = vmatpush3.bf16.msra.mxu1 %v3327_v7 }
  0x62   : > { %2886 = vmatprep.subr.bf16.mxu0 %v3336_v8  ;;  %3032 = vmatprep.subr.bf16.mxu1 %v3336_v8 }
  0x64   : > { %2839 = vmatmul.mubr.bf16.gmra.mxu0 %v3097_v38  ;;  %2871 = vmatmul.mubr.bf16.gmra.mxu1 %v3098_v39 }
  0x65   : > { %2887 = vmatpush3.bf16.msra.mxu0 %v3336_v8  ;;  %3040 = vmatpush3.bf16.msra.mxu1 %v3336_v8 }
  0x66   : > { %2888 = vmatprep.subr.bf16.mxu0 %v3345_v9  ;;  %3033 = vmatprep.subr.bf16.mxu1 %v3345_v9 }
  0x67   : > { %2890 = vmatprep.mubr.bf16.mxu0 %v3099_v40  ;;  %2898 = vmatprep.mubr.bf16.mxu1 %v3100_v41 }
  0x69   : > { %2889 = vmatpush3.bf16.msra.mxu0 %v3345_v9  ;;  %3041 = vmatpush3.bf16.msra.mxu1 %v3345_v9 }
  0x6c   : > { %2891 = vmatmul.mubr.bf16.vlgmr.msra.gmra.mxu0 %v3101_v42  ;;  %2899 = vmatmul.mubr.bf16.vlgmr.msra.gmra.mxu1 %v3102_v43 }
  0x6d   : > { %2894 = vmatprep.mubr.bf16.mxu0 %v3103_v44  ;;  %2902 = vmatprep.mubr.bf16.mxu1 %v3104_v45 }
  0x74   : > { %2895 = vmatmul.mubr.bf16.gmra.mxu0 %v3105_v46  ;;  %2903 = vmatmul.mubr.bf16.gmra.mxu1 %v3106_v47 }
  0xec   : > { %v3455_v48 = vpop.f32.mrf.mxu0  ;;  %v3457_v49 = vpop.f32.mrf.mxu1 }
  0xed   : > { %v659_v50 = vmax.f32 %v3455_v48, %v3457_v49 }
  0xee   : > { %v3461_v51 = vpop.f32.mrf.mxu0  ;;  %v3463_v52 = vpop.f32.mrf.mxu1 }
  0xf0   : > { %v3467_v54 = vpop.f32.mrf.mxu0  ;;  %v3469_v55 = vpop.f32.mrf.mxu1 }
  0xf2   : > { %v3473_v57 = vpop.f32.mrf.mxu0  ;;  %v3475_v58 = vpop.f32.mrf.mxu1 }
  0xf4   : > { %v3479_v60 = vpop.f32.mrf.mxu0  ;;  %v3481_v61 = vpop.f32.mrf.mxu1 }
  0xf6   : > { %v3485_v63 = vpop.f32.mrf.mxu0  ;;  %v3487_v0 = vpop.f32.mrf.mxu1 }
  0xf8   : > { %v3489_v1 = vpop.f32.mrf.mxu0  ;;  %v3491_v2 = vpop.f32.mrf.mxu1 }
  0xfa   : > { %v3493_v3 = vpop.f32.mrf.mxu0  ;;  %v3495_v4 = vpop.f32.mrf.mxu1 }
  0xfc   : > { %v2772_v5 = vpop.f32.mrf.mxu0  ;;  %v2804_v6 = vpop.f32.mrf.mxu1 }
  0xfd   : > { %v667_v47 = vmax.f32 %v2772_v5, %v2804_v6  ;;  %v3952_v5 = vmax.f32 %v3467_v54, %v3469_v55 }
  0xfe   : > { %v464_v7 = vpop.f32.mrf.mxu0  ;;  %v626_v8 = vpop.f32.mrf.mxu1 }
  0xff   : > { %v665_v56 = vmax.f32 %v464_v7, %v626_v8 }
 0x100   : > { %v2773_v9 = vpop.f32.mrf.mxu0  ;;  %v2805_v10 = vpop.f32.mrf.mxu1 }
 0x102   : > { %v467_v11 = vpop.f32.mrf.mxu0  ;;  %v629_v12 = vpop.f32.mrf.mxu1 }
 0x103   : > { %v666_v8 = vmax.f32 %v467_v11, %v629_v12 }
 0x104   : > { %v3497_v13 = vpop.f32.mrf.mxu0  ;;  %v3499_v14 = vpop.f32.mrf.mxu1 }
 0x106   : > { %v3501_v15 = vpop.f32.mrf.mxu0  ;;  %v3503_v16 = vpop.f32.mrf.mxu1 }
 0x107   : > { %v669_v11 = vmax.f32 %v3501_v15, %v3503_v16 }
 0x108   : > { %v3505_v17 = vpop.f32.mrf.mxu0  ;;  %v3507_v18 = vpop.f32.mrf.mxu1 }
 0x10a   : > { %v3509_v19 = vpop.f32.mrf.mxu0  ;;  %v3511_v20 = vpop.f32.mrf.mxu1 }
 0x10b   : > { %3943 = vst [vmem:[#allocation3_spill] sm:$0xff] %v3509_v19 }
 0x10c   : > { %v2828_v21 = vpop.f32.mrf.mxu0  ;;  %v2860_v22 = vpop.f32.mrf.mxu1 }
 0x10d   : > { %v837_v53 = vmax.f32 %v659_v50, %v2828_v21  ;;  %v3953_v21 = vmax.f32 %v3473_v57, %v3475_v58  ;;  %v3954_v57 = vmax.f32 %v3479_v60, %v3481_v61 }
 0x10e   : > { %v772_v23 = vpop.f32.mrf.mxu0  ;;  %v950_v24 = vpop.f32.mrf.mxu1 }
 0x10f   : > { %v1015_v48 = vmax.f32 %v837_v53, %v2860_v22  ;;  %v661_v53 = vmax.f32 %v3485_v63, %v3487_v0  ;;  %v664_v63 = vmax.f32 %v3489_v1, %v3491_v2  ;;  %v672_v0 = vmax.f32 %v3505_v17, %v3507_v18 }
 0x110   : > { %v2829_v25 = vpop.f32.mrf.mxu0  ;;  %v3513_v26 = vpop.f32.mrf.mxu1 }
 0x111   : > { %v838_v6 = vmax.f32 %v3952_v5, %v2829_v25 }
 0x112   : > { %v775_v27 = vpop.f32.mrf.mxu0  ;;  %v3515_v28 = vpop.f32.mrf.mxu1 }
 0x113   : > { %v1016_v12 = vmax.f32 %v838_v6, %v3513_v26 }
 0x114   : > { %v2832_v29 = vpop.f32.mrf.mxu0  ;;  %v3517_v30 = vpop.f32.mrf.mxu1 }
 0x115   : > { %3944 = vst [vmem:[#allocation4_spill] sm:$0xff] %v3517_v30  ;;  %v668_v30 = vmax.f32 %v2773_v9, %v2805_v10  ;;  %v836_v9 = vmax.f32 %v3953_v21, %v775_v27  ;;  %v841_v58 = vmax.f32 %v3954_v57, %v2832_v29 }
 0x116   : > { %v788_v31 = vpop.f32.mrf.mxu0  ;;  %v3519_v32 = vpop.f32.mrf.mxu1 }
 0x117   : > { %3945 = vst [vmem:[#allocation5_spill] sm:$0xff] %v3519_v32  ;;  %v1014_v15 = vmax.f32 %v836_v9, %v3515_v28  ;;  %v839_v16 = vmax.f32 %v661_v53, %v788_v31 }
 0x118   : > { %v3521_v33 = vpop.f32.mrf.mxu0  ;;  %v3523_v34 = vpop.f32.mrf.mxu1 }
 0x119   : > { %3946 = vst [vmem:[#allocation6_spill] sm:$0xff] %v3521_v33  ;;  %3947 = vst [vmem:[#allocation7_spill] sm:$0xff] %v3523_v34  ;;  %v3951_v34 = vmax.f32 %v3461_v51, %v3463_v52  ;;  %v671_v51 = vmax.f32 %v3497_v13, %v3499_v14 }
 0x11a   : > { %v3525_v35 = vpop.f32.mrf.mxu0  ;;  %v3527_v36 = vpop.f32.mrf.mxu1 }
 0x11b   : > { %3948 = vst [vmem:[#allocation8_spill] sm:$0xff] %v3525_v35  ;;  %3949 = vst [vmem:[#allocation9_spill] sm:$0xff] %v3527_v36  ;;  %v835_v35 = vmax.f32 %v3951_v34, %v772_v23 }
 0x11c   : > { %v2836_v37 = vpop.f32.mrf.mxu0  ;;  %v2868_v38 = vpop.f32.mrf.mxu1  ;;  %v3956_v2 = vld [vmem:[#allocation4_spill] sm:$0xff] }
 0x11d   : > { %v845_v36 = vmax.f32 %v667_v47, %v2836_v37  ;;  %v1013_v52 = vmax.f32 %v835_v35, %v950_v24  ;;  %v662_v35 = vmax.f32 %v3493_v3, %v3495_v4  ;;  %v1019_v37 = vmax.f32 %v841_v58, %v3956_v2 }
 0x11e   : > { %v804_v39 = vpop.f32.mrf.mxu0  ;;  %v982_v40 = vpop.f32.mrf.mxu1 }
 0x11f   : > { %v843_v19 = vmax.f32 %v665_v56, %v804_v39  ;;  %v1023_v49 = vmax.f32 %v845_v36, %v2868_v38  ;;  %v3955_v36 = vld [vmem:[#allocation3_spill] sm:$0xff] }
 0x120   : > { %v2837_v41 = vpop.f32.mrf.mxu0  ;;  %v2869_v42 = vpop.f32.mrf.mxu1  ;;  %v670_v1 = vmax.f32 %v3955_v36, %v3511_v20  ;;  %v3957_v17 = vld [vmem:[#allocation6_spill] sm:$0xff] }
 0x121   : > { %v846_v50 = vmax.f32 %v668_v30, %v2837_v41  ;;  %v1021_v23 = vmax.f32 %v843_v19, %v982_v40  ;;  %v842_v18 = vmax.f32 %v664_v63, %v3957_v17  ;;  %v3958_v41 = vld [vmem:[#allocation5_spill] sm:$0xff] }
 0x122   : > { %v807_v43 = vpop.f32.mrf.mxu0  ;;  %v985_v44 = vpop.f32.mrf.mxu1  ;;  %v3962_v9 = vld [vmem:[#allocation9_spill] sm:$0xff] }
 0x123   : > { %v844_v54 = vmax.f32 %v666_v8, %v807_v43  ;;  %v1024_v19 = vmax.f32 %v846_v50, %v2869_v42  ;;  %v1017_v42 = vmax.f32 %v839_v16, %v3958_v41  ;;  %v3959_v43 = vld [vmem:[#allocation8_spill] sm:$0xff] }
 0x124   : > { %v2840_v45 = vpop.f32.mrf.mxu0  ;;  %v3529_v46 = vpop.f32.mrf.mxu1  ;;  %v840_v3 = vmax.f32 %v662_v35, %v3959_v43 }
 0x125   : > { %v849_v22 = vmax.f32 %v671_v51, %v2840_v45  ;;  %v1022_v61 = vmax.f32 %v844_v54, %v985_v44 }
 0x126   : > { %v820_v62 = vpop.f32.mrf.mxu0  ;;  %v3531_v59 = vpop.f32.mrf.mxu1 }
 0x127   : > { %3950 = vst [vmem:[#allocation10_spill] sm:$0xff] %v3531_v59  ;;  %v847_v29 = vmax.f32 %v669_v11, %v820_v62  ;;  %v1027_v38 = vmax.f32 %v849_v22, %v3529_v46 }
 0x128   : > { %v2841_v32 = vpop.f32.mrf.mxu0  ;;  %v3539_v33 = vpop.f32.mrf.mxu1 }
 0x129   : > { %v850_v39 = vmax.f32 %v672_v0, %v2841_v32  ;;  %v3961_v32 = vld [vmem:[#allocation7_spill] sm:$0xff] }
 0x12a   : > { %v823_v59 = vpop.f32.mrf.mxu0  ;;  %v3544_v7 = vpop.f32.mrf.mxu1 }
 0x12b   : > { %v848_v47 = vmax.f32 %v670_v1, %v823_v59 }
 0x12c   : > { %v2892_v56 = vpop.f32.mrf.mxu0  ;;  %v2900_v10 = vpop.f32.mrf.mxu1 }
 0x12d   : > { %v3551_v55 = vmax.f32 %v1015_v48, %v2892_v56  ;;  %v3553_v25 = vmax.f32 %v1023_v49, %v2900_v10  ;;  %v1020_v48 = vmax.f32 %v842_v18, %v3961_v32  ;;  %v1028_v49 = vmax.f32 %v850_v39, %v3539_v33 }
 0x12e   : > { %v1128_v13 = vpop.f32.mrf.mxu0  ;;  %v1160_v14 = vpop.f32.mrf.mxu1  ;;  %v3960_v20 = vld [vmem:[#allocation10_spill] sm:$0xff]  ;;  %v1018_v56 = vmax.f32 %v840_v3, %v3962_v9  ;;  %v1026_v10 = vmax.f32 %v848_v47, %v3544_v7 }
 0x12f   : > { %v3563_v24 = vmax.f32 %v1013_v52, %v1128_v13  ;;  %v3565_v27 = vmax.f32 %v1021_v23, %v1160_v14  ;;  %v1025_v45 = vmax.f32 %v847_v29, %v3960_v20 }
 0x130   : > { %v2893_v26 = vpop.f32.mrf.mxu0  ;;  %v2901_v60 = vpop.f32.mrf.mxu1 }
 0x131   : > { %v3572_v30 = vmax.f32 %v1016_v12, %v2893_v26  ;;  %v3574_v34 = vmax.f32 %v1024_v19, %v2901_v60 }
 0x132   : > { %v1131_v28 = vpop.f32.mrf.mxu0  ;;  %v1163_v31 = vpop.f32.mrf.mxu1 }
 0x133   : > { %v3583_v62 = vmax.f32 %v1014_v15, %v1131_v28  ;;  %v3585_v40 = vmax.f32 %v1022_v61, %v1163_v31 }
 0x134   : > { %v2896_v4 = vpop.f32.mrf.mxu0  ;;  %v2904_v44 = vpop.f32.mrf.mxu1 }
 0x135   : > { %v3590_v5 = vmax.f32 %v1019_v37, %v2896_v4  ;;  %v3592_v6 = vmax.f32 %v1027_v38, %v2904_v44 }
 0x136   : > { %v1144_v8 = vpop.f32.mrf.mxu0  ;;  %v1176_v46 = vpop.f32.mrf.mxu1 }
 0x137   : > { %v1195_v50 = vmax.f32 %v1017_v42, %v1144_v8  ;;  %v3596_v51 = vmax.f32 %v1025_v45, %v1176_v46  ;;  %1210 = sbr.rel (%p2427_p4) target bundleno = 324 (0x144), region = 52 }
 0x138   : > { %v2897_v52 = vpop.f32.mrf.mxu0  ;;  %v2905_v21 = vpop.f32.mrf.mxu1 }
 0x139   : > { %v1198_v59 = vmax.f32 %v1020_v48, %v2897_v52  ;;  %v3600_v23 = vmax.f32 %v1028_v49, %v2905_v21 }
 0x13a   : > { %v1147_v54 = vpop.f32.mrf.mxu0  ;;  %v1179_v53 = vpop.f32.mrf.mxu1 }
 0x13b   : > { %v1196_v11 = vmax.f32 %v1018_v56, %v1147_v54  ;;  %v3602_v12 = vmax.f32 %v1026_v10, %v1179_v53 }
 0x13c   : > { %1211 = vst [vmem:[#allocation2 + $0x30] sm:$0xff] %v3563_v24  ;;  %1212 = vst [vmem:[#allocation2] sm:$0xff] %v3583_v62 }
 0x13d   : > { %1213 = vst [vmem:[#allocation2 + $0x58] sm:$0xff] %v3551_v55  ;;  %1214 = vst [vmem:[#allocation2 + $0x18] sm:$0xff] %v3572_v30 }
 0x13e   : > { %1215 = vst [vmem:[#allocation2 + $0x50] sm:$0xff] %v1195_v50  ;;  %1216 = vst [vmem:[#allocation2 + $0x68] sm:$0xff] %v1196_v11 }
 0x13f   : > { %1217 = vst [vmem:[#allocation2 + $0x8] sm:$0xff] %v3590_v5  ;;  %1218 = vst [vmem:[#allocation2 + $0x48] sm:$0xff] %v1198_v59 }
 0x140   : > { %1219 = vst [vmem:[#allocation2 + $0x40] sm:$0xff] %v3565_v27  ;;  %1220 = vst [vmem:[#allocation2 + $0x20] sm:$0xff] %v3585_v40 }
 0x141   : > { %1221 = vst [vmem:[#allocation2 + $0x10] sm:$0xff] %v3553_v25  ;;  %1222 = vst [vmem:[#allocation2 + $0x38] sm:$0xff] %v3574_v34 }
 0x142   : > { %1223 = vst [vmem:[#allocation2 + $0x60] sm:$0xff] %v3596_v51  ;;  %1224 = vst [vmem:[#allocation2 + $0x70] sm:$0xff] %v3602_v12 }
 0x143   : > { %1225 = vst [vmem:[#allocation2 + $0x78] sm:$0xff] %v3592_v6  ;;  %1226 = vst [vmem:[#allocation2 + $0x28] sm:$0xff] %v3600_v23 }
 0x144 PF: > { %p2428_p5 = scmp.eq.s32.totalorder %s3269_s25, 0 }
 0x146   : > { %1230 = sbr.rel (%p2428_p5) target bundleno = 342 (0x156), region = 56 }
 0x14b   : > { %v1231_v33 = vld [vmem:[#allocation2 + $0x30] sm:$0xff]  ;;  %v1232_v7 = vld [vmem:[#allocation2] sm:$0xff]  ;;  %v1233_v57 = vld [vmem:[#allocation2 + $0x58] sm:$0xff] }
 0x14c   : > { %v1247_v58 = vmax.f32 %v1231_v33, %v3563_v24  ;;  %v1248_v13 = vmax.f32 %v1232_v7, %v3583_v62  ;;  %v1249_v14 = vmax.f32 %v1233_v57, %v3551_v55  ;;  %v1234_v19 = vld [vmem:[#allocation2 + $0x18] sm:$0xff]  ;;  %v1235_v22 = vld [vmem:[#allocation2 + $0x50] sm:$0xff]  ;;  %v1236_v63 = vld [vmem:[#allocation2 + $0x68] sm:$0xff] }
 0x14d   : > { %v1250_v0 = vmax.f32 %v1234_v19, %v3572_v30  ;;  %v1251_v15 = vmax.f32 %v1235_v22, %v1195_v50  ;;  %v1252_v16 = vmax.f32 %v1236_v63, %v1196_v11  ;;  %v1237_v26 = vld [vmem:[#allocation2 + $0x8] sm:$0xff]  ;;  %v1239_v61 = vld [vmem:[#allocation2 + $0x40] sm:$0xff]  ;;  %v1241_v55 = vld [vmem:[#allocation2 + $0x10] sm:$0xff] }
 0x14e   : > { %v1238_v60 = vld [vmem:[#allocation2 + $0x48] sm:$0xff]  ;;  %1263 = vst [vmem:[#allocation2 + $0x30] sm:$0xff] %v1247_v58  ;;  %1264 = vst [vmem:[#allocation2] sm:$0xff] %v1248_v13  ;;  %v1253_v29 = vmax.f32 %v1237_v26, %v3590_v5  ;;  %v1255_v35 = vmax.f32 %v1239_v61, %v3565_v27  ;;  %v1240_v36 = vld [vmem:[#allocation2 + $0x20] sm:$0xff]  ;;  %v1257_v2 = vmax.f32 %v1241_v55, %v3553_v25 }
 0x14f   : > { %1265 = vst [vmem:[#allocation2 + $0x58] sm:$0xff] %v1249_v14  ;;  %v1254_v24 = vmax.f32 %v1238_v60, %v1198_v59  ;;  %v1242_v1 = vld [vmem:[#allocation2 + $0x38] sm:$0xff]  ;;  %1266 = vst [vmem:[#allocation2 + $0x18] sm:$0xff] %v1250_v0  ;;  %v1256_v30 = vmax.f32 %v1240_v36, %v3585_v40  ;;  %v1243_v17 = vld [vmem:[#allocation2 + $0x60] sm:$0xff] }
 0x150   : > { %1267 = vst [vmem:[#allocation2 + $0x50] sm:$0xff] %v1251_v15  ;;  %1268 = vst [vmem:[#allocation2 + $0x68] sm:$0xff] %v1252_v16  ;;  %v1258_v37 = vmax.f32 %v1242_v1, %v3574_v34  ;;  %v1244_v18 = vld [vmem:[#allocation2 + $0x70] sm:$0xff]  ;;  %v1245_v28 = vld [vmem:[#allocation2 + $0x78] sm:$0xff]  ;;  %v1259_v27 = vmax.f32 %v1243_v17, %v3596_v51 }
 0x151   : > { %1269 = vst [vmem:[#allocation2 + $0x8] sm:$0xff] %v1253_v29  ;;  %1270 = vst [vmem:[#allocation2 + $0x48] sm:$0xff] %v1254_v24  ;;  %v1260_v31 = vmax.f32 %v1244_v18, %v3602_v12  ;;  %v1261_v38 = vmax.f32 %v1245_v28, %v3592_v6  ;;  %v1246_v39 = vld [vmem:[#allocation2 + $0x28] sm:$0xff] }
 0x152   : > { %1271 = vst [vmem:[#allocation2 + $0x40] sm:$0xff] %v1255_v35  ;;  %1272 = vst [vmem:[#allocation2 + $0x20] sm:$0xff] %v1256_v30  ;;  %v1262_v25 = vmax.f32 %v1246_v39, %v3600_v23 }
 0x153   : > { %1273 = vst [vmem:[#allocation2 + $0x10] sm:$0xff] %v1257_v2  ;;  %1274 = vst [vmem:[#allocation2 + $0x38] sm:$0xff] %v1258_v37 }
 0x154   : > { %1275 = vst [vmem:[#allocation2 + $0x60] sm:$0xff] %v1259_v27  ;;  %1276 = vst [vmem:[#allocation2 + $0x70] sm:$0xff] %v1260_v31 }
 0x155   : > { %1277 = vst [vmem:[#allocation2 + $0x78] sm:$0xff] %v1261_v38  ;;  %1278 = vst [vmem:[#allocation2 + $0x28] sm:$0xff] %v1262_v25 }
 0x156 PF: > { %p2429_p6 = scmp.ne.s32.totalorder %s3269_s25, 4 }
 0x157   : > { %s3214_s29 = smov (!%p2429_p6), 16   ;;  %s3215_s9 = smov (!%p2429_p6), 48  }
 0x158   : > { %1282 = sbr.rel (%p2429_p6) target bundleno = 1888 (0x760), region = 60  ;;  %s3216_s16 = smov (!%p2429_p6), 32  }
 0x159   : > { %s3217_s17 = smov (!%p2429_p6), 64   ;;  %s3218_s22 = smov (!%p2429_p6), 80  }
 0x15a   : > { %s3219_s23 = smov (!%p2429_p6), 96  }
 0x15d   : > { %v1284_v34 = vld [vmem:[#allocation2] sm:$0xff]  ;;  %v1286_v43 = vld [vmem:[#allocation2 + $0x18] sm:$0xff]  ;;  %v1293_v45 = vld [vmem:[#allocation2 + $0x10] sm:$0xff]  ;;  %v3220_v18 = vmov 0.0   ;;  %vm1394_vm0 = vcmask 130048   ;;  %vm1396_vm1 = vcmask 261120  }
 0x15e   : > { %v1292_v62 = vld [vmem:[#allocation2 + $0x20] sm:$0xff]  ;;  %v1294_v3 = vld [vmem:[#allocation2 + $0x38] sm:$0xff]  ;;  %v1287_v5 = vld [vmem:[#allocation2 + $0x50] sm:$0xff]  ;;  %2906 = vmatprep.subr.bf16.mxu1 %v3220_v18  ;;  %vm1398_vm2 = vcmask 392192   ;;  %vm1400_vm3 = vcmask 523264   ;;  %vm1402_vm4 = vcmask 654336  }
 0x15f   : > { %v3636_v40 = vld [vmem:[%s3937_s2] ss:$0 sm:$0xff]  ;;  %v1285_v4 = vld [vmem:[#allocation2 + $0x58] sm:$0xff]  ;;  %v1288_v49 = vld [vmem:[#allocation2 + $0x68] sm:$0xff]  ;;  %vm1404_vm5 = vcmask 785408   ;;  %vm1406_vm6 = vcmask 916480  }
 0x160   : > { %v1307_v41 = vadd.f32 %v3636_v40, %v1284_v34  ;;  %v1315_v42 = vadd.f32 %v3636_v40, %v1292_v62  ;;  %v1309_v44 = vadd.f32 %v3636_v40, %v1286_v43  ;;  %v1317_v20 = vadd.f32 %v3636_v40, %v1294_v3  ;;  %v1295_v6 = vld [vmem:[#allocation2 + $0x60] sm:$0xff]  ;;  %v1296_v50 = vld [vmem:[#allocation2 + $0x70] sm:$0xff]  ;;  %v1289_v51 = vld [vmem:[#allocation2 + $0x8] sm:$0xff] }
 0x161   : > { %v1308_v47 = vadd.f32 %v3636_v40, %v1285_v4  ;;  %v1316_v32 = vadd.f32 %v3636_v40, %v1293_v45  ;;  %v1310_v48 = vadd.f32 %v3636_v40, %v1287_v5  ;;  %v1318_v56 = vadd.f32 %v3636_v40, %v1295_v6  ;;  %v1297_v10 = vld [vmem:[#allocation2 + $0x78] sm:$0xff]  ;;  %v1290_v59 = vld [vmem:[#allocation2 + $0x48] sm:$0xff]  ;;  %v3144_v61 = vld [vmem:[%s3938_s3 + $0x70] sm:$0xff]  }
 0x162   : > { %v1323_v8 = vmax.f32 %v1307_v41, 0.0  ;;  %v1331_v46 = vmax.f32 %v1315_v42, 0.0  ;;  %v1325_v52 = vmax.f32 %v1309_v44, 0.0  ;;  %v1333_v21 = vmax.f32 %v1317_v20, 0.0  ;;  %v1298_v23 = vld [vmem:[#allocation2 + $0x28] sm:$0xff]  ;;  %v3142_v13 = vld [vmem:[%s3938_s3 + $0x78] sm:$0xff]  }
 0x163   : > { %v1324_v9 = vmax.f32 %v1308_v47, 0.0  ;;  %v1332_v53 = vmax.f32 %v1316_v32, 0.0  ;;  %v1326_v11 = vmax.f32 %v1310_v48, 0.0  ;;  %v1311_v12 = vadd.f32 %v3636_v40, %v1288_v49  ;;  %v3143_v0 = vld [vmem:[%s3938_s3 + $0x38] sm:$0xff]   ;;  %2670 = vmatprep.subr.bf16.mxu0 %v3142_v13  ;;  %v3145_v24 = vld [vmem:[%s3938_s3 + $0x30] sm:$0xff]   ;;  %v3146_v35 = vld [vmem:[%s3938_s3 + $0x68] sm:$0xff]  }
 0x164   : > { %v3107_v54 = vpack.i.bf16 %v1323_v8, %v1331_v46  ;;  %v3117_v33 = vpack.i.bf16 %v1325_v52, %v1333_v21  ;;  %v1334_v7 = vmax.f32 %v1318_v56, 0.0  ;;  %v1319_v57 = vadd.f32 %v3636_v40, %v1296_v50  ;;  %2671 = vmatpush3.bf16.msra.mxu0 %v3143_v0  ;;  %v3147_v2 = vld [vmem:[%s3938_s3 + $0x28] sm:$0xff]   ;;  %v3148_v37 = vld [vmem:[%s3938_s3 + $0x60] sm:$0xff]   ;;  %v3150_v27 = vld [vmem:[%s3938_s3 + $0x58] sm:$0xff]  }
 0x165   : > { %v1312_v58 = vadd.f32 %v3636_v40, %v1289_v51  ;;  %v3112_v14 = vpack.i.bf16 %v1324_v9, %v1332_v53  ;;  %v1327_v19 = vmax.f32 %v1311_v12, 0.0  ;;  %v1320_v22 = vadd.f32 %v3636_v40, %v1297_v10  ;;  %2672 = vmatprep.subr.bf16.mxu0 %v3144_v61  ;;  %v3149_v28 = vld [vmem:[%s3938_s3 + $0x20] sm:$0xff]   ;;  %v3151_v31 = vld [vmem:[%s3938_s3 + $0x18] sm:$0xff]   ;;  %v3152_v38 = vld [vmem:[%s3938_s3 + $0x50] sm:$0xff]  }
 0x166   : > { %3108 = vrot.lane.b32.xlu0 %v3107_v54, %s3214_s29  ;;  %v1313_v63 = vadd.f32 %v3636_v40, %v1290_v59  ;;  %3118 = vrot.lane.b32.xlu1 %v3117_v33, %s3215_s9  ;;  %v3122_v15 = vpack.i.bf16 %v1326_v11, %v1334_v7  ;;  %v1335_v16 = vmax.f32 %v1319_v57, 0.0  ;;  %v1321_v60 = vadd.f32 %v3636_v40, %v1298_v23  ;;  %s3221_s29 = smov 112   ;;  %v3158_v39 = vld [vmem:[%s3940_s5 + $0x38] sm:$0xff]   ;;  %v3153_v25 = vld [vmem:[%s3938_s3 + $0x10] sm:$0xff]   ;;  %v1291_v20 = vld [vmem:[#allocation2 + $0x40] sm:$0xff] }
 0x167   : > { %v1328_v26 = vmax.f32 %v1312_v58, 0.0  ;;  %v1336_v29 = vmax.f32 %v1320_v22, 0.0  ;;  %2907 = vmatpush3.bf16.msra.mxu1 %v3158_v39  ;;  %v3159_v34 = vld [vmem:[%s3940_s5 + $0x30] sm:$0xff]   ;;  %v3154_v62 = vld [vmem:[%s3938_s3 + $0x48] sm:$0xff]   ;;  %v3156_v43 = vld [vmem:[%s3938_s3 + $0x40] sm:$0xff]   ;;  %v1314_v47 = vadd.f32 %v3636_v40, %v1291_v20  ;;  %vm3222_vm7 = vmmov 0  }
 0x168   : > { %v3127_v36 = vpack.i.bf16 %v1327_v19, %v1335_v16  ;;  %v1329_v55 = vmax.f32 %v1313_v63, 0.0  ;;  %v1337_v1 = vmax.f32 %v1321_v60, 0.0  ;;  %2673 = vmatpush3.bf16.msra.mxu0 %v3145_v24  ;;  %2908 = vmatprep.subr.bf16.mxu1 %v3220_v18  ;;  %v3155_v41 = vld [vmem:[%s3938_s3 + $0x8] sm:$0xff]   ;;  %v3157_v3 = vld [vmem:[%s3938_s3] sm:$0xff]   ;;  %v3162_v44 = vld [vmem:[%s3940_s5 + $0x18] sm:$0xff]  }
 0x169   : > { %v3132_v30 = vpack.i.bf16 %v1328_v26, %v1336_v29  ;;  %2674 = vmatprep.subr.bf16.mxu0 %v3146_v35  ;;  %v3160_v42 = vld [vmem:[%s3940_s5 + $0x28] sm:$0xff]   ;;  %v3161_v4 = vld [vmem:[%s3940_s5 + $0x20] sm:$0xff]   ;;  %v1283_v45 = vld [vmem:[#allocation2 + $0x30] sm:$0xff]  ;;  %v1330_v46 = vmax.f32 %v1314_v47, 0.0  ;;  %2922 = vmatprep.mubr.msk.bf16.mxu1 %vm3222_vm7, %v3220_v18 }
 0x16a   : > { %3113 = vrot.lane.b32.xlu0 %v3112_v14, %s3216_s16  ;;  %3123 = vrot.lane.b32.xlu1 %v3122_v15, %s3217_s17  ;;  %v3137_v17 = vpack.i.bf16 %v1329_v55, %v1337_v1  ;;  %v1306_v5 = vadd.f32 %v3636_v40, %v1283_v45  ;;  %v3163_v55 = vld [vmem:[%s3940_s5 + $0x10] sm:$0xff]   ;;  %v3164_v1 = vld [vmem:[%s3940_s5 + $0x8] sm:$0xff]  }
 0x16b   : > { %2909 = vmatpush3.bf16.msra.mxu1 %v3159_v34  ;;  %v2431_v39 = vld [vmem:[%s3939_s4] ss:$0 sm:$0xff]  ;;  %v3174_v20 = vld [vmem:[%s3940_s5 + $0xb8] sm:$0xff]   ;;  %v3175_v45 = vld [vmem:[%s3940_s5 + $0xb0] sm:$0xff]  }
 0x16c   : > { %2675 = vmatpush3.bf16.msra.mxu0 %v3147_v2  ;;  %2910 = vmatprep.subr.bf16.mxu1 %v3220_v18  ;;  %v1322_v49 = vmax.f32 %v1306_v5, 0.0  ;;  %v3166_v2 = vld [vmem:[%s3940_s5 + $0x78] sm:$0xff]   ;;  %v3176_v47 = vld [vmem:[%s3940_s5 + $0xa8] sm:$0xff]   ;;  %v3177_v5 = vld [vmem:[%s3940_s5 + $0xa0] sm:$0xff]  }
 0x16d   : > { %2676 = vmatprep.subr.bf16.mxu0 %v3148_v37  ;;  %v3167_v37 = vld [vmem:[%s3940_s5 + $0x70] sm:$0xff]  }
 0x16e   : > { %3128 = vrot.lane.b32.xlu0 %v3127_v36, %s3218_s22  ;;  %3133 = vrot.lane.b32.xlu1 %v3132_v30, %s3219_s23  ;;  %v3165_v30 = vld [vmem:[%s3940_s5] sm:$0xff]  }
 0x16f   : > { %2911 = vmatpush3.bf16.msra.mxu1 %v3160_v42 }
 0x170   : > { %2677 = vmatpush3.bf16.msra.mxu0 %v3149_v28  ;;  %2912 = vmatprep.subr.bf16.mxu1 %v3220_v18  ;;  %v3169_v28 = vld [vmem:[%s3940_s5 + $0x60] sm:$0xff]  }
 0x171   : > { %2678 = vmatprep.subr.bf16.mxu0 %v3150_v27  ;;  %v3170_v27 = vld [vmem:[%s3940_s5 + $0x58] sm:$0xff]  }
 0x172   : > { %3138 = vrot.lane.b32.xlu0 %v3137_v17, %s3221_s29  ;;  %v3168_v17 = vld [vmem:[%s3940_s5 + $0x68] sm:$0xff]  }
 0x173   : > { %2913 = vmatpush3.bf16.msra.mxu1 %v3161_v4  ;;  %v3172_v4 = vld [vmem:[%s3940_s5 + $0x48] sm:$0xff]  }
 0x174   : > { %2679 = vmatpush3.bf16.msra.mxu0 %v3151_v31  ;;  %2914 = vmatprep.subr.bf16.mxu1 %v3220_v18  ;;  %v3171_v31 = vld [vmem:[%s3940_s5 + $0x50] sm:$0xff]  }
 0x175   : > { %2680 = vmatprep.subr.bf16.mxu0 %v3152_v38 }
 0x177   : > { %2915 = vmatpush3.bf16.msra.mxu1 %v3162_v44  ;;  %v3173_v44 = vld [vmem:[%s3940_s5 + $0x40] sm:$0xff]  }
 0x178   : > { %2681 = vmatpush3.bf16.msra.mxu0 %v3153_v25  ;;  %2916 = vmatprep.subr.bf16.mxu1 %v3220_v18 }
 0x179   : > { %2682 = vmatprep.subr.bf16.mxu0 %v3154_v62 }
 0x17b   : > { %2917 = vmatpush3.bf16.msra.mxu1 %v3163_v55 }
 0x17c   : > { %2683 = vmatpush3.bf16.msra.mxu0 %v3155_v41  ;;  %2918 = vmatprep.subr.bf16.mxu1 %v3220_v18 }
 0x17d   : > { %2684 = vmatprep.subr.bf16.mxu0 %v3156_v43 }
 0x17f   : > { %2919 = vmatpush3.bf16.msra.mxu1 %v3164_v1 }
 0x180   : > { %2685 = vmatpush3.bf16.msra.mxu0 %v3157_v3  ;;  %2920 = vmatprep.subr.bf16.mxu1 %v3220_v18 }
 0x181   : > { %2926 = vmatprep.subr.bf16.mxu0 %v3220_v18 }
 0x183   : > { %2921 = vmatpush3.bf16.msra.mxu1 %v3165_v30 }
 0x184   : > { %2946 = vmatprep.subr.bf16.mxu1 %v3220_v18 }
 0x1d8   : > { %v3109_v6 = vpop.permute.xlu0 %3108  ;;  %v3119_v8 = vpop.permute.xlu1 %3118 }
 0x1d9   : > { %v3111_v32 = vunpack.i.h.bf16 %v3109_v6  ;;  %v3110_v48 = vunpack.i.l.bf16 %v3109_v6  ;;  %v3121_v51 = vunpack.i.h.bf16 %v3119_v8  ;;  %v3120_v52 = vunpack.i.l.bf16 %v3119_v8  ;;  %v3178_v6 = vld [vmem:[%s3940_s5 + $0x98] sm:$0xff]   ;;  %v3179_v8 = vld [vmem:[%s3940_s5 + $0x90] sm:$0xff]  }
 0x1db   : > { %v1395_v10 = vsel %vm1394_vm0, %v1322_v49, %v3111_v32  ;;  %v1408_v59 = vsel %vm1394_vm0, %v1330_v46, %v3110_v48  ;;  %v2448_v46 = vld [vmem:[%s3941_s6] ss:$0 sm:$0xff] }
 0x1dc   : > { %v3114_v50 = vpop.permute.xlu0 %3113  ;;  %v3124_v56 = vpop.permute.xlu1 %3123 }
 0x1dd   : > { %v3116_v21 = vunpack.i.h.bf16 %v3114_v50  ;;  %v3115_v9 = vunpack.i.l.bf16 %v3114_v50  ;;  %v3126_v23 = vunpack.i.h.bf16 %v3124_v56  ;;  %v3125_v40 = vunpack.i.l.bf16 %v3124_v56  ;;  %v3181_v56 = vld [vmem:[%s3940_s5 + $0x80] sm:$0xff]  }
 0x1df   : > { %v1397_v54 = vsel %vm1396_vm1, %v1395_v10, %v3116_v21  ;;  %v1409_v53 = vsel %vm1396_vm1, %v1408_v59, %v3115_v9  ;;  %v3180_v9 = vld [vmem:[%s3940_s5 + $0x88] sm:$0xff]   ;;  %v3182_v10 = vld [vmem:[%s3940_s5 + $0xf8] sm:$0xff]   ;;  %v3183_v59 = vld [vmem:[%s3940_s5 + $0xf0] sm:$0xff]  }
 0x1e0   : > { %v1399_v11 = vsel %vm1398_vm2, %v1397_v54, %v3121_v51  ;;  %v1410_v12 = vsel %vm1398_vm2, %v1409_v53, %v3120_v52  ;;  %v3129_v33 = vpop.permute.xlu0 %3128  ;;  %v3134_v14 = vpop.permute.xlu1 %3133  ;;  %v3186_v54 = vld [vmem:[%s3940_s5 + $0xd8] sm:$0xff]   ;;  %v3187_v53 = vld [vmem:[%s3940_s5 + $0xd0] sm:$0xff]  }
 0x1e1   : > { %v1401_v7 = vsel %vm1400_vm3, %v1399_v11, %v3126_v23  ;;  %v1411_v57 = vsel %vm1400_vm3, %v1410_v12, %v3125_v40  ;;  %v3131_v58 = vunpack.i.h.bf16 %v3129_v33  ;;  %v3130_v13 = vunpack.i.l.bf16 %v3129_v33  ;;  %v3184_v23 = vld [vmem:[%s3940_s5 + $0xe8] sm:$0xff]   ;;  %v3185_v40 = vld [vmem:[%s3940_s5 + $0xe0] sm:$0xff]  }
 0x1e2   : > { %v3136_v19 = vunpack.i.h.bf16 %v3134_v14  ;;  %v3135_v22 = vunpack.i.l.bf16 %v3134_v14  ;;  %v2474_v11 = vld [vmem:[%s3941_s6 + $0x1] ss:$0 sm:$0xff] }
 0x1e3   : > { %v1403_v63 = vsel %vm1402_vm4, %v1401_v7, %v3131_v58  ;;  %v1412_v0 = vsel %vm1402_vm4, %v1411_v57, %v3130_v13 }
 0x1e4   : > { %v3139_v15 = vpop.permute.xlu0 %3138  ;;  %v1413_v60 = vsel %vm1404_vm5, %v1412_v0, %v3135_v22  ;;  %v1405_v61 = vsel %vm1404_vm5, %v1403_v63, %v3136_v19  ;;  %v3188_v19 = vld [vmem:[%s3940_s5 + $0xc8] sm:$0xff]   ;;  %v3189_v22 = vld [vmem:[%s3940_s5 + $0xc0] sm:$0xff]   ;;  %v3190_v63 = vld [vmem:[%s3940_s5 + $0x138] sm:$0xff]  }
 0x1e5   : > { %v3141_v16 = vunpack.i.h.bf16 %v3139_v15  ;;  %v3140_v26 = vunpack.i.l.bf16 %v3139_v15  ;;  %v3191_v0 = vld [vmem:[%s3940_s5 + $0x130] sm:$0xff]   ;;  %v3192_v15 = vld [vmem:[%s3940_s5 + $0x128] sm:$0xff]  }
 0x1e7   : > { %v1414_v29 = vsel %vm1406_vm6, %v1413_v60, %v3140_v26  ;;  %v1407_v24 = vsel %vm1406_vm6, %v1405_v61, %v3141_v16  ;;  %v3193_v16 = vld [vmem:[%s3940_s5 + $0x120] sm:$0xff]   ;;  %v3194_v26 = vld [vmem:[%s3940_s5 + $0x118] sm:$0xff]   ;;  %v3195_v60 = vld [vmem:[%s3940_s5 + $0x110] sm:$0xff]  }
 0x1e8   : > { %v1416_v35 = vpack.c.bf16 %v1414_v29, %v1414_v29  ;;  %v1415_v36 = vpack.c.bf16 %v1407_v24, %v1407_v24  ;;  %v2500_v61 = vld [vmem:[%s3941_s6 + $0x2] ss:$0 sm:$0xff] }
 0x1ea   : > { %1584 = vmatprep.mubr.bf16.mxu0 %v1416_v35 }
 0x1eb   : > { %1585 = vmatmul.mubr.bf16.vlgmr.msra.gmra.mxu0 %v1415_v36 }
 0x1ec   : > { %2942 = vmatprep.mubr.msk.bf16.mxu0 %vm3222_vm7, %v3220_v18  ;;  %2927 = vmatpush3.bf16.msra.mxu0 %v3166_v2  ;;  %v3196_v2 = vld [vmem:[%s3940_s5 + $0x108] sm:$0xff]  }
 0x1ed   : > { %2928 = vmatprep.subr.bf16.mxu0 %v3220_v18 }
 0x1f0   : > { %2929 = vmatpush3.bf16.msra.mxu0 %v3167_v37  ;;  %v3197_v37 = vld [vmem:[%s3940_s5 + $0x100] sm:$0xff]  }
 0x1f1   : > { %2930 = vmatprep.subr.bf16.mxu0 %v3220_v18 }
 0x1f4   : > { %2931 = vmatpush3.bf16.msra.mxu0 %v3168_v17  ;;  %v3198_v17 = vld [vmem:[%s3940_s5 + $0x178] sm:$0xff]  }
 0x1f5   : > { %2932 = vmatprep.subr.bf16.mxu0 %v3220_v18 }
 0x1f8   : > { %2933 = vmatpush3.bf16.msra.mxu0 %v3169_v28  ;;  %v3199_v28 = vld [vmem:[%s3940_s5 + $0x170] sm:$0xff]  }
 0x1f9   : > { %2934 = vmatprep.subr.bf16.mxu0 %v3220_v18 }
 0x1fc   : > { %2935 = vmatpush3.bf16.msra.mxu0 %v3170_v27  ;;  %v3200_v27 = vld [vmem:[%s3940_s5 + $0x168] sm:$0xff]  }
 0x1fd   : > { %2936 = vmatprep.subr.bf16.mxu0 %v3220_v18 }
 0x200   : > { %2937 = vmatpush3.bf16.msra.mxu0 %v3171_v31  ;;  %v3201_v31 = vld [vmem:[%s3940_s5 + $0x160] sm:$0xff]  }
 0x201   : > { %2938 = vmatprep.subr.bf16.mxu0 %v3220_v18 }
 0x204   : > { %2939 = vmatpush3.bf16.msra.mxu0 %v3172_v4 }
 0x205   : > { %2940 = vmatprep.subr.bf16.mxu0 %v3220_v18 }
 0x208   : > { %2941 = vmatpush3.bf16.msra.mxu0 %v3173_v44  ;;  %v3204_v44 = vld [vmem:[%s3940_s5 + $0x148] sm:$0xff]  }
 0x209   : > { %2966 = vmatprep.subr.bf16.mxu0 %v3220_v18 }
 0x2ab   : > { %v2686_v38 = vpop.f32.mrf.mxu0 }
 0x2ad   : > { %v2687_v25 = vpop.f32.mrf.mxu0 }
 0x2ae   : > { %v2688_v34 = vadd.f32 %v2687_v25, %v2686_v38  ;;  %v3202_v38 = vld [vmem:[%s3940_s5 + $0x158] sm:$0xff]   ;;  %v2526_v25 = vld [vmem:[%s3941_s6 + $0x3] ss:$0 sm:$0xff] }
 0x2af   : > { %v2689_v62 = vpop.f32.mrf.mxu0 }
 0x2b0   : > { %v1587_v41 = vadd.f32 %v2688_v34, %v2431_v39  ;;  %v3203_v39 = vld [vmem:[%s3940_s5 + $0x150] sm:$0xff]  }
 0x2b1   : > { %v2690_v42 = vpop.f32.mrf.mxu0 }
 0x2b2   : > { %v1592_v43 = vmax.f32 %v1587_v41, 0.0 }
 0x2b4   : > { %v1593_v3 = vpack.c.bf16 %v1592_v43, %v1592_v43 }
 0x2b6   : > { %2923 = vmatmul.mubr.bf16.vlgmr.msra.gmra.mxu1 %v1593_v3 }
 0x2b7   : > { %2962 = vmatprep.mubr.msk.bf16.mxu1 %vm3222_vm7, %v3220_v18  ;;  %2947 = vmatpush3.bf16.msra.mxu1 %v3174_v20  ;;  %v3205_v20 = vld [vmem:[%s3940_s5 + $0x140] sm:$0xff]  }
 0x2b8   : > { %2948 = vmatprep.subr.bf16.mxu1 %v3220_v18 }
 0x2bb   : > { %2949 = vmatpush3.bf16.msra.mxu1 %v3175_v45  ;;  %v2552_v45 = vld [vmem:[%s3941_s6 + $0x4] ss:$0 sm:$0xff] }
 0x2bc   : > { %2950 = vmatprep.subr.bf16.mxu1 %v3220_v18 }
 0x2bf   : > { %2951 = vmatpush3.bf16.msra.mxu1 %v3176_v47 }
 0x2c0   : > { %2952 = vmatprep.subr.bf16.mxu1 %v3220_v18 }
 0x2c3   : > { %2953 = vmatpush3.bf16.msra.mxu1 %v3177_v5 }
 0x2c4   : > { %2954 = vmatprep.subr.bf16.mxu1 %v3220_v18 }
 0x2c7   : > { %2955 = vmatpush3.bf16.msra.mxu1 %v3178_v6 }
 0x2c8   : > { %2956 = vmatprep.subr.bf16.mxu1 %v3220_v18 }
 0x2cb   : > { %2957 = vmatpush3.bf16.msra.mxu1 %v3179_v8 }
 0x2cc   : > { %2958 = vmatprep.subr.bf16.mxu1 %v3220_v18 }
 0x2cf   : > { %2959 = vmatpush3.bf16.msra.mxu1 %v3180_v9 }
 0x2d0   : > { %2960 = vmatprep.subr.bf16.mxu1 %v3220_v18 }
 0x2d3   : > { %2961 = vmatpush3.bf16.msra.mxu1 %v3181_v56 }
 0x2d4   : > { %2986 = vmatprep.subr.bf16.mxu1 %v3220_v18 }
 0x376   : > { %v1699_v32 = vpop.f32.mrf.mxu1 }
 0x377   : > { %v1700_v48 = vadd.f32 %v2448_v46, %v1699_v32 }
 0x378   : > { %v2924_v49 = vpop.f32.mrf.mxu1 }
 0x379   : > { %v1705_v50 = vmax.f32 %v1700_v48, 0.0 }
 0x37a   : > { %v1702_v51 = vpop.f32.mrf.mxu1 }
 0x37b   : > { %v1706_v52 = vpack.c.bf16 %v1705_v50, %v1705_v50 }
 0x37c   : > { %v2925_v21 = vpop.f32.mrf.mxu1 }
 0x37d   : > { %2943 = vmatmul.mubr.bf16.vlgmr.msra.gmra.mxu0 %v1706_v52 }
 0x37e   : > { %2982 = vmatprep.mubr.msk.bf16.mxu0 %vm3222_vm7, %v3220_v18  ;;  %2967 = vmatpush3.bf16.msra.mxu0 %v3182_v10 }
 0x37f   : > { %2968 = vmatprep.subr.bf16.mxu0 %v3220_v18 }
 0x382   : > { %2969 = vmatpush3.bf16.msra.mxu0 %v3183_v59 }
 0x383   : > { %2970 = vmatprep.subr.bf16.mxu0 %v3220_v18 }
 0x386   : > { %2971 = vmatpush3.bf16.msra.mxu0 %v3184_v23 }
 0x387   : > { %2972 = vmatprep.subr.bf16.mxu0 %v3220_v18 }
 0x38a   : > { %2973 = vmatpush3.bf16.msra.mxu0 %v3185_v40 }
 0x38b   : > { %2974 = vmatprep.subr.bf16.mxu0 %v3220_v18 }
 0x38e   : > { %2975 = vmatpush3.bf16.msra.mxu0 %v3186_v54 }
 0x38f   : > { %2976 = vmatprep.subr.bf16.mxu0 %v3220_v18 }
 0x392   : > { %2977 = vmatpush3.bf16.msra.mxu0 %v3187_v53 }
 0x393   : > { %2978 = vmatprep.subr.bf16.mxu0 %v3220_v18 }
 0x396   : > { %2979 = vmatpush3.bf16.msra.mxu0 %v3188_v19 }
 0x397   : > { %2980 = vmatprep.subr.bf16.mxu0 %v3220_v18 }
 0x39a   : > { %2981 = vmatpush3.bf16.msra.mxu0 %v3189_v22 }
 0x39b   : > { %3006 = vmatprep.subr.bf16.mxu0 %v3220_v18 }
 0x43d   : > { %v1814_v12 = vpop.f32.mrf.mxu0 }
 0x43e   : > { %v1815_v33 = vadd.f32 %v2474_v11, %v1814_v12 }
 0x43f   : > { %v2944_v7 = vpop.f32.mrf.mxu0 }
 0x440   : > { %v1820_v57 = vmax.f32 %v1815_v33, 0.0 }
 0x441   : > { %v1817_v58 = vpop.f32.mrf.mxu0 }
 0x442   : > { %v1821_v13 = vpack.c.bf16 %v1820_v57, %v1820_v57 }
 0x443   : > { %v2945_v14 = vpop.f32.mrf.mxu0 }
 0x444   : > { %2963 = vmatmul.mubr.bf16.vlgmr.msra.gmra.mxu1 %v1821_v13 }
 0x445   : > { %3002 = vmatprep.mubr.msk.bf16.mxu1 %vm3222_vm7, %v3220_v18  ;;  %2987 = vmatpush3.bf16.msra.mxu1 %v3190_v63 }
 0x446   : > { %2988 = vmatprep.subr.bf16.mxu1 %v3220_v18 }
 0x449   : > { %2989 = vmatpush3.bf16.msra.mxu1 %v3191_v0 }
 0x44a   : > { %2990 = vmatprep.subr.bf16.mxu1 %v3220_v18 }
 0x44d   : > { %2991 = vmatpush3.bf16.msra.mxu1 %v3192_v15 }
 0x44e   : > { %2992 = vmatprep.subr.bf16.mxu1 %v3220_v18 }
 0x451   : > { %2993 = vmatpush3.bf16.msra.mxu1 %v3193_v16 }
 0x452   : > { %2994 = vmatprep.subr.bf16.mxu1 %v3220_v18 }
 0x455   : > { %2995 = vmatpush3.bf16.msra.mxu1 %v3194_v26 }
 0x456   : > { %2996 = vmatprep.subr.bf16.mxu1 %v3220_v18 }
 0x459   : > { %2997 = vmatpush3.bf16.msra.mxu1 %v3195_v60 }
 0x45a   : > { %2998 = vmatprep.subr.bf16.mxu1 %v3220_v18 }
 0x45d   : > { %2999 = vmatpush3.bf16.msra.mxu1 %v3196_v2 }
 0x45e   : > { %3000 = vmatprep.subr.bf16.mxu1 %v3220_v18 }
 0x461   : > { %3001 = vmatpush3.bf16.msra.mxu1 %v3197_v37 }
 0x504   : > { %v1929_v29 = vpop.f32.mrf.mxu1 }
 0x505   : > { %v1930_v24 = vadd.f32 %v2500_v61, %v1929_v29 }
 0x506   : > { %v2964_v35 = vpop.f32.mrf.mxu1 }
 0x507   : > { %v1935_v36 = vmax.f32 %v1930_v24, 0.0 }
 0x508   : > { %v1932_v55 = vpop.f32.mrf.mxu1 }
 0x509   : > { %v1936_v1 = vpack.c.bf16 %v1935_v36, %v1935_v36 }
 0x50a   : > { %v2965_v30 = vpop.f32.mrf.mxu1 }
 0x50b   : > { %2983 = vmatmul.mubr.bf16.vlgmr.msra.gmra.mxu0 %v1936_v1 }
 0x50c   : > { %3022 = vmatprep.mubr.msk.bf16.mxu0 %vm3222_vm7, %v3220_v18  ;;  %3007 = vmatpush3.bf16.msra.mxu0 %v3198_v17 }
 0x50d   : > { %3008 = vmatprep.subr.bf16.mxu0 %v3220_v18 }
 0x510   : > { %3009 = vmatpush3.bf16.msra.mxu0 %v3199_v28 }
 0x511   : > { %3010 = vmatprep.subr.bf16.mxu0 %v3220_v18 }
 0x514   : > { %3011 = vmatpush3.bf16.msra.mxu0 %v3200_v27 }
 0x515   : > { %3012 = vmatprep.subr.bf16.mxu0 %v3220_v18 }
 0x518   : > { %3013 = vmatpush3.bf16.msra.mxu0 %v3201_v31 }
 0x519   : > { %3014 = vmatprep.subr.bf16.mxu0 %v3220_v18 }
 0x51c   : > { %3015 = vmatpush3.bf16.msra.mxu0 %v3202_v38 }
 0x51d   : > { %3016 = vmatprep.subr.bf16.mxu0 %v3220_v18 }
 0x520   : > { %3017 = vmatpush3.bf16.msra.mxu0 %v3203_v39 }
 0x521   : > { %3018 = vmatprep.subr.bf16.mxu0 %v3220_v18 }
 0x524   : > { %3019 = vmatpush3.bf16.msra.mxu0 %v3204_v44 }
 0x525   : > { %3020 = vmatprep.subr.bf16.mxu0 %v3220_v18  ;;  %v2578_v18 = vld [vmem:[%s3941_s6 + $0x5] ss:$0 sm:$0xff] }
 0x528   : > { %3021 = vmatpush3.bf16.msra.mxu0 %v3205_v20 }
 0x5cb   : > { %v2044_v34 = vpop.f32.mrf.mxu0 }
 0x5cc   : > { %v2045_v62 = vadd.f32 %v2526_v25, %v2044_v34 }
 0x5cd   : > { %v2984_v41 = vpop.f32.mrf.mxu0 }
 0x5ce   : > { %v2050_v42 = vmax.f32 %v2045_v62, 0.0 }
 0x5cf   : > { %v2047_v43 = vpop.f32.mrf.mxu0 }
 0x5d0   : > { %v2051_v3 = vpack.c.bf16 %v2050_v42, %v2050_v42 }
 0x5d1   : > { %v2985_v4 = vpop.f32.mrf.mxu0 }
 0x5d2   : > { %3003 = vmatmul.mubr.bf16.vlgmr.msra.gmra.mxu1 %v2051_v3 }
 0x692   : > { %v2159_v47 = vpop.f32.mrf.mxu1 }
 0x693   : > { %v2160_v5 = vadd.f32 %v2552_v45, %v2159_v47 }
 0x694   : > { %v3004_v6 = vpop.f32.mrf.mxu1 }
 0x695   : > { %v2165_v8 = vmax.f32 %v2160_v5, 0.0 }
 0x696   : > { %v2162_v46 = vpop.f32.mrf.mxu1 }
 0x697   : > { %v2166_v32 = vpack.c.bf16 %v2165_v8, %v2165_v8 }
 0x698   : > { %v3005_v48 = vpop.f32.mrf.mxu1 }
 0x699   : > { %3023 = vmatmul.mubr.bf16.vlgmr.msra.gmra.mxu0 %v2166_v32 }
 0x759   : > { %v2274_v49 = vpop.f32.mrf.mxu0 }
 0x75a   : > { %v2275_v50 = vadd.f32 %v2578_v18, %v2274_v49 }
 0x75b   : > { %v3024_v51 = vpop.f32.mrf.mxu0 }
 0x75c   : > { %2280 = vst [vmem:[%s3942_s7] sm:$0xff] %v2275_v50 }
 0x75d   : > { %v2277_v52 = vpop.f32.mrf.mxu0 }
 0x75f   : > { %v3025_v21 = vpop.f32.mrf.mxu0 }
 0x760 PF: > { %s17_s24 = sadd.s32 1, %s3212_s24  }
 0x761   : > { %p14_p7 = scmp.ge.s32.totalorder %s17_s24, 7  }
 0x763   :  { %16 = sbr.rel (!%p14_p7) target bundleno = 1 (0x1), region = 100 }

</bundles_post_ra>
